<compile_context>
chip_gen: v5e
topology: v5e:2x2
jax: 0.10.0
libtpu: 0.0.40
codegen_flags: <defaults>
</compile_context>

<pallas_src>
import jax
import jax.numpy as jnp
from jax.experimental import pallas as pl
from jax.experimental.pallas import tpu as pltpu

# ---------------- scaled-down DistilBERT config ----------------
VOCAB = 1000
MAX_POS = 64
HIDDEN = 128          # stands in for 768 (lane axis)
N_HEADS = 4           # stands in for 12
HEAD_DIM = HIDDEN // N_HEADS
FFN = 256             # stands in for 3072
N_LAYERS = 2          # stands in for 6
N_CLASSES = 2
CLS_PAD = 128         # lane-dense padded logits width (sliced to N_CLASSES outside)
LN_EPS = 1e-12
ATT_SCALE = 1.0 / float(HEAD_DIM) ** 0.5
MASK_MIN = float(jnp.finfo(jnp.float32).min)   # reference masked_fill value
NEG_BIG = 1e9                                   # kernel additive mask magnitude

LAYER_KEYS = ('wq', 'bq', 'wk', 'bk', 'wv', 'bv', 'wo', 'bo',
              'ln1_g', 'ln1_b', 'w1', 'b1', 'w2', 'b2', 'ln2_g', 'ln2_b')


# ---------------- shared math ----------------
def _layernorm(x, g, b):
    mu = jnp.mean(x, axis=-1, keepdims=True)
    var = jnp.mean((x - mu) ** 2, axis=-1, keepdims=True)
    return (x - mu) * jax.lax.rsqrt(var + LN_EPS) * g + b


# ======================= fused Pallas kernel =======================
def fused_forward_kernel(
    # inputs (per grid point (b, l)):
    emb_ref,                     # (S, H)    word+pos embeddings of batch b (pre-LN)
    maskb_ref,                   # (1, 1, S) additive key mask: 0 keep / -1e9 pad
    embg_ref, embb_ref,          # (1, H)    embedding LayerNorm
    wq_ref, bq_ref,              # (nH, H, dH) / (nH, 1, dH)   layer l
    wk_ref, bk_ref,
    wv_ref, bv_ref,
    wo_ref,                      # (nH, dH, H)
    bo_ref,                      # (1, H)
    ln1g_ref, ln1b_ref,          # (1, H)
    w1_ref, b1_ref,              # (H, FFN) / (1, FFN)
    w2_ref, b2_ref,              # (FFN, H) / (1, H)
    ln2g_ref, ln2b_ref,          # (1, H)
    prew_ref, preb_ref,          # (H, H) / (1, H)             pre_classifier
    clsw_ref, clsb_ref,          # (H, CLS_PAD) / (1, CLS_PAD) classifier (zero-padded)
    # outputs:
    out_ref,                     # (1, CLS_PAD) padded logits of batch b
    # scratch:
    h_scr,                       # (S, H) hidden state, VMEM-resident across layers
):
    layer = pl.program_id(1)

    # ----- layer-0 prologue: embedding LayerNorm into the resident hidden -----
    @pl.when(layer == 0)
    def _():
        h_scr[...] = _layernorm(emb_ref[...], embg_ref[...], embb_ref[...])

    x = h_scr[...]                                        # (S, H) float32
    seq = x.shape[0]

    # ----- multi-head self-attention: single batched contraction over heads ---
    xb = jnp.broadcast_to(x[None], (N_HEADS, seq, HIDDEN))
    q = jnp.einsum('hsk,hkd->hsd', xb, wq_ref[...],
                   preferred_element_type=jnp.float32) + bq_ref[...]
    k = jnp.einsum('hsk,hkd->hsd', xb, wk_ref[...],
                   preferred_element_type=jnp.float32) + bk_ref[...]
    v = jnp.einsum('hsk,hkd->hsd', xb, wv_ref[...],
                   preferred_element_type=jnp.float32) + bv_ref[...]

    s = jnp.einsum('hqd,hkd->hqk', q * ATT_SCALE, k,
                   preferred_element_type=jnp.float32)    # (nH, S, S)
    s = s + maskb_ref[...]                                # additive pad mask (keys)
    m = jnp.max(s, axis=-1, keepdims=True)
    e = jnp.exp(s - m)
    p = e * pl.reciprocal(jnp.sum(e, axis=-1, keepdims=True), approx=True)
    ctx = jnp.einsum('hqk,hkd->hqd', p, v,
                     preferred_element_type=jnp.float32)  # (nH, S, dH)
    attn = jnp.sum(jnp.einsum('hqd,hdm->hqm', ctx, wo_ref[...],
                              preferred_element_type=jnp.float32),
                   axis=0) + bo_ref[...]                  # (S, H)
    h1 = _layernorm(x + attn, ln1g_ref[...], ln1b_ref[...])

    # ----- feed-forward -----
    ff = jnp.dot(h1, w1_ref[...], preferred_element_type=jnp.float32) + b1_ref[...]
    # TODO(synk): HF DistilBERT uses erf-exact GELU; tanh approximation used here.
    ff = jax.nn.gelu(ff, approximate=True)
    ff = jnp.dot(ff, w2_ref[...], preferred_element_type=jnp.float32) + b2_ref[...]
    h2 = _layernorm(h1 + ff, ln2g_ref[...], ln2b_ref[...])
    h_scr[...] = h2

    # ----- last-layer epilogue: classifier head, lane-dense padded logits -----
    @pl.when(layer == pl.num_programs(1) - 1)
    def _():
        cls = h2[0:1, :]                                  # pooler = hidden_state[:, 0]
        hd = jnp.dot(cls, prew_ref[...],
                     preferred_element_type=jnp.float32) + preb_ref[...]
        hd = jnp.maximum(hd, 0.0)                         # ReLU; Dropout(0.3) = identity
        out_ref[...] = jnp.dot(hd, clsw_ref[...],
                               preferred_element_type=jnp.float32) + clsb_ref[...]


# ======================= pallas_call wrapper =======================
def _batch_spec(tail):
    nd = len(tail)
    return pl.BlockSpec((None,) + tuple(tail), lambda b, l: (b,) + (0,) * nd)


def _layer_spec(tail):
    nd = len(tail)
    return pl.BlockSpec((None,) + tuple(tail), lambda b, l: (l,) + (0,) * nd)


def _const_spec(shape):
    nd = len(shape)
    return pl.BlockSpec(tuple(shape), lambda b, l: (0,) * nd)


def _build_fused_call(B, S):
    in_specs = [
        _batch_spec((S, HIDDEN)),                   # emb
        _batch_spec((1, 1, S)),                     # mask bias
        _const_spec((1, HIDDEN)),                   # emb_ln_g
        _const_spec((1, HIDDEN)),                   # emb_ln_b
        _layer_spec((N_HEADS, HIDDEN, HEAD_DIM)),   # wq
        _layer_spec((N_HEADS, 1, HEAD_DIM)),        # bq
        _layer_spec((N_HEADS, HIDDEN, HEAD_DIM)),   # wk
        _layer_spec((N_HEADS, 1, HEAD_DIM)),        # bk
        _layer_spec((N_HEADS, HIDDEN, HEAD_DIM)),   # wv
        _layer_spec((N_HEADS, 1, HEAD_DIM)),        # bv
        _layer_spec((N_HEADS, HEAD_DIM, HIDDEN)),   # wo
        _layer_spec((1, HIDDEN)),                   # bo
        _layer_spec((1, HIDDEN)),                   # ln1_g
        _layer_spec((1, HIDDEN)),                   # ln1_b
        _layer_spec((HIDDEN, FFN)),                 # w1
        _layer_spec((1, FFN)),                      # b1
        _layer_spec((FFN, HIDDEN)),                 # w2
        _layer_spec((1, HIDDEN)),                   # b2
        _layer_spec((1, HIDDEN)),                   # ln2_g
        _layer_spec((1, HIDDEN)),                   # ln2_b
        _const_spec((HIDDEN, HIDDEN)),              # pre_w
        _const_spec((1, HIDDEN)),                   # pre_b
        _const_spec((HIDDEN, CLS_PAD)),             # cls_w (padded)
        _const_spec((1, CLS_PAD)),                  # cls_b (padded)
    ]
    out_spec = pl.BlockSpec((None, 1, CLS_PAD), lambda b, l: (b, 0, 0))
    return pl.pallas_call(
        fused_forward_kernel,
        out_shape=jax.ShapeDtypeStruct((B, 1, CLS_PAD), jnp.float32),
        grid_spec=pltpu.PrefetchScalarGridSpec(
            num_scalar_prefetch=0,
            grid=(B, N_LAYERS),
            in_specs=in_specs,
            out_specs=out_spec,
            scratch_shapes=[pltpu.VMEM((S, HIDDEN), jnp.float32)],
        ),
        compiler_params=pltpu.CompilerParams(
            dimension_semantics=("parallel", "arbitrary"),
            vmem_limit_bytes=48 * 1024 * 1024,
        ),
    )


def pallas_forward(packed, input_ids, attention_mask):
    B, S = input_ids.shape
    # Embedding gather + positional add stays in plain JAX (XLA gather); the
    # embedding LayerNorm is fused into the layer-0 prologue of the kernel.
    # TODO(synk): move the row gather in-kernel via PrefetchScalarGridSpec +
    # pl.Element once vocab/seq are large enough to matter.
    emb = packed['word_emb'][input_ids] + packed['pos_emb'][jnp.arange(S)][None, :, :]
    mask_bias = ((attention_mask.astype(jnp.float32) - 1.0) * NEG_BIG).reshape(B, 1, 1, S)

    fused = _build_fused_call(B, S)
    out = fused(
        emb, mask_bias, packed['emb_ln_g'], packed['emb_ln_b'],
        packed['wq'], packed['bq'], packed['wk'], packed['bk'],
        packed['wv'], packed['bv'], packed['wo'], packed['bo'],
        packed['ln1_g'], packed['ln1_b'], packed['w1'], packed['b1'],
        packed['w2'], packed['b2'], packed['ln2_g'], packed['ln2_b'],
        packed['pre_w'], packed['pre_b'], packed['cls_w_pad'], packed['cls_b_pad'])
    return out[:, 0, :N_CLASSES]


# ---------------- parameter init (natural / PyTorch layout) ----------------
def init_params(key):
    keys = iter(jax.random.split(key, 128))

    def nrm(shape):
        return jax.random.normal(next(keys), shape, jnp.float32) * 0.02

    params = {
        'word_emb': nrm((VOCAB, HIDDEN)),
        'pos_emb': nrm((MAX_POS, HIDDEN)),
        'emb_ln_g': jnp.ones((1, HIDDEN), jnp.float32),
        'emb_ln_b': jnp.zeros((1, HIDDEN), jnp.float32),
        'layers': [],
        'pre_w': nrm((HIDDEN, HIDDEN)),          # pre_classifier (in, out)
        'pre_b': nrm((1, HIDDEN)),
        'cls_w': nrm((HIDDEN, N_CLASSES)),       # classifier (in, out)
        'cls_b': nrm((1, N_CLASSES)),
    }
    for _ in range(N_LAYERS):
        params['layers'].append(dict(
            wq=nrm((HIDDEN, HIDDEN)), bq=nrm((1, HIDDEN)),
            wk=nrm((HIDDEN, HIDDEN)), bk=nrm((1, HIDDEN)),
            wv=nrm((HIDDEN, HIDDEN)), bv=nrm((1, HIDDEN)),
            wo=nrm((HIDDEN, HIDDEN)), bo=nrm((1, HIDDEN)),
            ln1_g=jnp.ones((1, HIDDEN), jnp.float32),
            ln1_b=jnp.zeros((1, HIDDEN), jnp.float32),
            w1=nrm((HIDDEN, FFN)), b1=nrm((1, FFN)),
            w2=nrm((FFN, HIDDEN)), b2=nrm((1, HIDDEN)),
            ln2_g=jnp.ones((1, HIDDEN), jnp.float32),
            ln2_b=jnp.zeros((1, HIDDEN), jnp.float32),
        ))
    return params


# ----- one-time restructuring into the stacked / per-head kernel layout -----
def _split_out_heads(w):       # (H, H) -> (nH, H, dH)  (output features -> heads)
    return w.reshape(HIDDEN, N_HEADS, HEAD_DIM).transpose(1, 0, 2)


def _split_out_heads_bias(b):  # (1, H) -> (nH, 1, dH)
    return b.reshape(1, N_HEADS, HEAD_DIM).transpose(1, 0, 2)


def _split_in_heads(w):        # (H, H) -> (nH, dH, H)  (input features -> heads)
    return w.reshape(N_HEADS, HEAD_DIM, HIDDEN)


def pack_params(params):
    layers = params['layers']

    def stack(fn, key):
        return jnp.stack([fn(lp[key]) for lp in layers], axis=0)

    ident = lambda w: w
    packed = {
        'word_emb': params['word_emb'],
        'pos_emb': params['pos_emb'],
        'emb_ln_g': params['emb_ln_g'],
        'emb_ln_b': params['emb_ln_b'],
        'wq': stack(_split_out_heads, 'wq'), 'bq': stack(_split_out_heads_bias, 'bq'),
        'wk': stack(_split_out_heads, 'wk'), 'bk': stack(_split_out_heads_bias, 'bk'),
        'wv': stack(_split_out_heads, 'wv'), 'bv': stack(_split_out_heads_bias, 'bv'),
        'wo': stack(_split_in_heads, 'wo'), 'bo': stack(ident, 'bo'),
        'ln1_g': stack(ident, 'ln1_g'), 'ln1_b': stack(ident, 'ln1_b'),
        'w1': stack(ident, 'w1'), 'b1': stack(ident, 'b1'),
        'w2': stack(ident, 'w2'), 'b2': stack(ident, 'b2'),
        'ln2_g': stack(ident, 'ln2_g'), 'ln2_b': stack(ident, 'ln2_b'),
        'pre_w': params['pre_w'], 'pre_b': params['pre_b'],
        'cls_w_pad': jnp.zeros((HIDDEN, CLS_PAD), jnp.float32)
                        .at[:, :N_CLASSES].set(params['cls_w']),
        'cls_b_pad': jnp.zeros((1, CLS_PAD), jnp.float32)
                        .at[:, :N_CLASSES].set(params['cls_b']),
    }
    return packed


# ---------------- pure-JAX reference (mirrors the PyTorch module) -----------
def _encoder_layer_reference(x, mask, wq, bq, wk, bk, wv, bv, wo, bo,
                             ln1_g, ln1_b, w1, b1, w2, b2, ln2_g, ln2_b):
    B, S, H = x.shape
    x2 = x.reshape(B * S, H)
    q = (jnp.dot(x2, wq) + bq).reshape(B, S, H)
    k = (jnp.dot(x2, wk) + bk).reshape(B, S, H)
    v = (jnp.dot(x2, wv) + bv).reshape(B, S, H)

    ctx_heads = []
    for h in range(N_HEADS):
        sl = slice(h * HEAD_DIM, (h + 1) * HEAD_DIM)
        qh = q[:, :, sl] * ATT_SCALE
        s = jnp.einsum('bqd,bkd->bqk', qh, k[:, :, sl])
        s = jnp.where(mask[:, None, :] > 0.5, s, MASK_MIN)       # masked_fill
        m = jnp.max(s, axis=-1, keepdims=True)
        e = jnp.exp(s - m)
        p = e / jnp.sum(e, axis=-1, keepdims=True)
        ctx_heads.append(jnp.einsum('bqk,bkd->bqd', p, v[:, :, sl]))
    ctx = jnp.concatenate(ctx_heads, axis=-1).reshape(B * S, H)

    attn_out = jnp.dot(ctx, wo) + bo
    h1 = _layernorm(x2 + attn_out, ln1_g, ln1_b)
    ff = jnp.dot(h1, w1) + b1
    ff = jax.nn.gelu(ff, approximate=True)
    ff = jnp.dot(ff, w2) + b2
    h2 = _layernorm(h1 + ff, ln2_g, ln2_b)
    return h2.reshape(B, S, H)


def reference_forward(params, input_ids, attention_mask):
    B, S = input_ids.shape
    emb = params['word_emb'][input_ids] + params['pos_emb'][jnp.arange(S)][None, :, :]
    hidden = _layernorm(emb, params['emb_ln_g'], params['emb_ln_b'])
    mask_f = attention_mask.astype(jnp.float32)
    for lp in params['layers']:
        hidden = _encoder_layer_reference(hidden, mask_f,
                                          *[lp[k] for k in LAYER_KEYS])
    cls = hidden[:, 0, :]
    hd = jnp.maximum(jnp.dot(cls, params['pre_w']) + params['pre_b'], 0.0)
    return jnp.dot(hd, params['cls_w']) + params['cls_b']


if __name__ == "__main__":
    key = jax.random.PRNGKey(0)
    k_params, k_ids = jax.random.split(key)

    B, S = 2, 8
    params = init_params(k_params)
    packed = pack_params(params)

    input_ids = jax.random.randint(k_ids, (B, S), 0, VOCAB, dtype=jnp.int32)
    attention_mask = jnp.array([[1, 1, 1, 1, 1, 1, 1, 1],
                                [1, 1, 1, 1, 1, 1, 0, 0]], dtype=jnp.int32)

    fwd = jax.jit(pallas_forward)
    logits = jax.block_until_ready(fwd(packed, input_ids, attention_mask))

    ref = reference_forward(params, input_ids, attention_mask)

    assert logits.shape == (B, N_CLASSES)
    assert bool(jnp.all(jnp.isfinite(logits)))
    assert bool(jnp.allclose(logits, ref, atol=2e-3, rtol=2e-3)), (logits, ref)

    print("KERNEL_OK")
</pallas_src>

<mosaic_0001>
module attributes {stable_mosaic.version = 11 : i64} {
  func.func @fused_forward_kernel(%arg0: i32, %arg1: i32, %arg2: memref<1x8x128xf32, #tpu.memory_space<vmem>>, %arg3: memref<1x1x1x8xf32, #tpu.memory_space<vmem>>, %arg4: memref<1x128xf32, #tpu.memory_space<vmem>>, %arg5: memref<1x128xf32, #tpu.memory_space<vmem>>, %arg6: memref<1x4x128x32xf32, #tpu.memory_space<vmem>>, %arg7: memref<1x4x1x32xf32, #tpu.memory_space<vmem>>, %arg8: memref<1x4x128x32xf32, #tpu.memory_space<vmem>>, %arg9: memref<1x4x1x32xf32, #tpu.memory_space<vmem>>, %arg10: memref<1x4x128x32xf32, #tpu.memory_space<vmem>>, %arg11: memref<1x4x1x32xf32, #tpu.memory_space<vmem>>, %arg12: memref<1x4x32x128xf32, #tpu.memory_space<vmem>>, %arg13: memref<1x1x128xf32, #tpu.memory_space<vmem>>, %arg14: memref<1x1x128xf32, #tpu.memory_space<vmem>>, %arg15: memref<1x1x128xf32, #tpu.memory_space<vmem>>, %arg16: memref<1x128x256xf32, #tpu.memory_space<vmem>>, %arg17: memref<1x1x256xf32, #tpu.memory_space<vmem>>, %arg18: memref<1x256x128xf32, #tpu.memory_space<vmem>>, %arg19: memref<1x1x128xf32, #tpu.memory_space<vmem>>, %arg20: memref<1x1x128xf32, #tpu.memory_space<vmem>>, %arg21: memref<1x1x128xf32, #tpu.memory_space<vmem>>, %arg22: memref<128x128xf32, #tpu.memory_space<vmem>>, %arg23: memref<1x128xf32, #tpu.memory_space<vmem>>, %arg24: memref<128x128xf32, #tpu.memory_space<vmem>>, %arg25: memref<1x128xf32, #tpu.memory_space<vmem>>, %arg26: memref<1x1x128xf32, #tpu.memory_space<vmem>>, %arg27: memref<8x128xf32, #tpu.memory_space<vmem>>) attributes {dimension_semantics = [#tpu.dimension_semantics<parallel>, #tpu.dimension_semantics<arbitrary>], iteration_bounds = array<i64: 2, 2>, scalar_prefetch = 0 : i64, scratch_operands = 1 : i64, tpu.core_type = #tpu.core_type<tc>, window_params = [{transform_indices = @transform_0, window_bounds = array<i64: 1, 8, 128>}, {transform_indices = @transform_1, window_bounds = array<i64: 1, 1, 1, 8>}, {pipeline_mode = #tpu.pipeline_mode<synchronous>, transform_indices = @transform_2, window_bounds = array<i64: 1, 128>}, {pipeline_mode = #tpu.pipeline_mode<synchronous>, transform_indices = @transform_3, window_bounds = array<i64: 1, 128>}, {transform_indices = @transform_4, window_bounds = array<i64: 1, 4, 128, 32>}, {transform_indices = @transform_5, window_bounds = array<i64: 1, 4, 1, 32>}, {transform_indices = @transform_6, window_bounds = array<i64: 1, 4, 128, 32>}, {transform_indices = @transform_7, window_bounds = array<i64: 1, 4, 1, 32>}, {transform_indices = @transform_8, window_bounds = array<i64: 1, 4, 128, 32>}, {transform_indices = @transform_9, window_bounds = array<i64: 1, 4, 1, 32>}, {transform_indices = @transform_10, window_bounds = array<i64: 1, 4, 32, 128>}, {transform_indices = @transform_11, window_bounds = array<i64: 1, 1, 128>}, {transform_indices = @transform_12, window_bounds = array<i64: 1, 1, 128>}, {transform_indices = @transform_13, window_bounds = array<i64: 1, 1, 128>}, {transform_indices = @transform_14, window_bounds = array<i64: 1, 128, 256>}, {transform_indices = @transform_15, window_bounds = array<i64: 1, 1, 256>}, {transform_indices = @transform_16, window_bounds = array<i64: 1, 256, 128>}, {transform_indices = @transform_17, window_bounds = array<i64: 1, 1, 128>}, {transform_indices = @transform_18, window_bounds = array<i64: 1, 1, 128>}, {transform_indices = @transform_19, window_bounds = array<i64: 1, 1, 128>}, {pipeline_mode = #tpu.pipeline_mode<synchronous>, transform_indices = @transform_20, window_bounds = array<i64: 128, 128>}, {pipeline_mode = #tpu.pipeline_mode<synchronous>, transform_indices = @transform_21, window_bounds = array<i64: 1, 128>}, {pipeline_mode = #tpu.pipeline_mode<synchronous>, transform_indices = @transform_22, window_bounds = array<i64: 128, 128>}, {pipeline_mode = #tpu.pipeline_mode<synchronous>, transform_indices = @transform_23, window_bounds = array<i64: 1, 128>}, {transform_indices = @transform_24, window_bounds = array<i64: 1, 1, 128>}]} {
    %c0_i32 = arith.constant 0 : i32
    %0 = arith.cmpi eq, %arg1, %c0_i32 : i32
    %1 = arith.extui %0 : i1 to i32
    %c0_i32_0 = arith.constant 0 : i32
    %2 = arith.cmpi ne, %1, %c0_i32_0 : i32
    scf.if %2 {
      %c0_89 = arith.constant 0 : index
      %c0_90 = arith.constant 0 : index
      %c0_91 = arith.constant 0 : index
      %139 = vector.load %arg2[%c0_89, %c0_90, %c0_91] : memref<1x8x128xf32, #tpu.memory_space<vmem>>, vector<1x8x128xf32>
      %140 = vector.shape_cast %139 : vector<1x8x128xf32> to vector<8x128xf32>
      %c0_92 = arith.constant 0 : index
      %c0_93 = arith.constant 0 : index
      %141 = vector.load %arg4[%c0_92, %c0_93] : memref<1x128xf32, #tpu.memory_space<vmem>>, vector<1x128xf32>
      %c0_94 = arith.constant 0 : index
      %c0_95 = arith.constant 0 : index
      %142 = vector.load %arg5[%c0_94, %c0_95] : memref<1x128xf32, #tpu.memory_space<vmem>>, vector<1x128xf32>
      %cst_96 = arith.constant dense<0.000000e+00> : vector<8xf32>
      %143 = vector.multi_reduction <add>, %140, %cst_96 [1] : vector<8x128xf32> to vector<8xf32>
      %144 = vector.shape_cast %143 : vector<8xf32> to vector<8x1xf32>
      %cst_97 = arith.constant 1.280000e+02 : f32
      %145 = vector.broadcast %cst_97 : f32 to vector<8x1xf32>
      %146 = arith.divf %144, %145 : vector<8x1xf32>
      %147 = vector.broadcast %146 : vector<8x1xf32> to vector<8x128xf32>
      %148 = arith.subf %140, %147 : vector<8x128xf32>
      %149 = arith.mulf %148, %148 : vector<8x128xf32>
      %cst_98 = arith.constant dense<0.000000e+00> : vector<8xf32>
      %150 = vector.multi_reduction <add>, %149, %cst_98 [1] : vector<8x128xf32> to vector<8xf32>
      %151 = vector.shape_cast %150 : vector<8xf32> to vector<8x1xf32>
      %cst_99 = arith.constant 1.280000e+02 : f32
      %152 = vector.broadcast %cst_99 : f32 to vector<8x1xf32>
      %153 = arith.divf %151, %152 : vector<8x1xf32>
      %154 = vector.broadcast %146 : vector<8x1xf32> to vector<8x128xf32>
      %155 = arith.subf %140, %154 : vector<8x128xf32>
      %cst_100 = arith.constant 9.99999996E-13 : f32
      %156 = vector.broadcast %cst_100 : f32 to vector<8x1xf32>
      %157 = arith.addf %153, %156 : vector<8x1xf32>
      %158 = math.rsqrt %157 : vector<8x1xf32>
      %159 = vector.broadcast %158 : vector<8x1xf32> to vector<8x128xf32>
      %160 = arith.mulf %155, %159 : vector<8x128xf32>
      %161 = vector.broadcast %141 : vector<1x128xf32> to vector<8x128xf32>
      %162 = arith.mulf %160, %161 : vector<8x128xf32>
      %163 = vector.broadcast %142 : vector<1x128xf32> to vector<8x128xf32>
      %164 = arith.addf %162, %163 : vector<8x128xf32>
      %c0_101 = arith.constant 0 : index
      %c0_102 = arith.constant 0 : index
      %165 = vector.load %arg27[%c0_101, %c0_102] : memref<8x128xf32, #tpu.memory_space<vmem>>, vector<8x128xf32>
      tpu.vector_store %arg27[%c0_101, %c0_102], %164 {strides = array<i32>} : memref<8x128xf32, #tpu.memory_space<vmem>>, vector<8x128xf32>,
    } else {
    }
    %c0 = arith.constant 0 : index
    %c0_1 = arith.constant 0 : index
    %3 = vector.load %arg27[%c0, %c0_1] : memref<8x128xf32, #tpu.memory_space<vmem>>, vector<8x128xf32>
    %4 = vector.shape_cast %3 : vector<8x128xf32> to vector<1x8x128xf32>
    %5 = vector.shape_cast %4 : vector<1x8x128xf32> to vector<1x8x128xf32>
    %6 = vector.broadcast %5 : vector<1x8x128xf32> to vector<4x8x128xf32>
    %c0_2 = arith.constant 0 : index
    %c0_3 = arith.constant 0 : index
    %c0_4 = arith.constant 0 : index
    %c0_5 = arith.constant 0 : index
    %7 = vector.load %arg6[%c0_2, %c0_3, %c0_4, %c0_5] : memref<1x4x128x32xf32, #tpu.memory_space<vmem>>, vector<1x4x128x32xf32>
    %8 = vector.shape_cast %7 : vector<1x4x128x32xf32> to vector<4x128x32xf32>
    "tpu.trace_start"() <{level = 10 : i32, message = "hsk,hkd->hsd"}> : () -> ()
    %cst = arith.constant dense<0.000000e+00> : vector<4x8x32xf32>
    %9 = tpu.matmul %6, %8, %cst {dimension_numbers = #tpu.dot_dimension_numbers<[2], [1], [1], [2], [0, 0, 0, 1, 1, 2], [0], [0]>} : vector<4x8x128xf32>, vector<4x128x32xf32>, vector<4x8x32xf32> -> vector<4x8x32xf32>
    "tpu.trace_stop"() : () -> ()
    %c0_6 = arith.constant 0 : index
    %c0_7 = arith.constant 0 : index
    %c0_8 = arith.constant 0 : index
    %c0_9 = arith.constant 0 : index
    %10 = vector.load %arg7[%c0_6, %c0_7, %c0_8, %c0_9] : memref<1x4x1x32xf32, #tpu.memory_space<vmem>>, vector<1x4x1x32xf32>
    %11 = vector.shape_cast %10 : vector<1x4x1x32xf32> to vector<4x1x32xf32>
    %12 = vector.broadcast %11 : vector<4x1x32xf32> to vector<4x8x32xf32>
    %13 = arith.addf %9, %12 : vector<4x8x32xf32>
    %c0_10 = arith.constant 0 : index
    %c0_11 = arith.constant 0 : index
    %c0_12 = arith.constant 0 : index
    %c0_13 = arith.constant 0 : index
    %14 = vector.load %arg8[%c0_10, %c0_11, %c0_12, %c0_13] : memref<1x4x128x32xf32, #tpu.memory_space<vmem>>, vector<1x4x128x32xf32>
    %15 = vector.shape_cast %14 : vector<1x4x128x32xf32> to vector<4x128x32xf32>
    "tpu.trace_start"() <{level = 10 : i32, message = "hsk,hkd->hsd"}> : () -> ()
    %cst_14 = arith.constant dense<0.000000e+00> : vector<4x8x32xf32>
    %16 = tpu.matmul %6, %15, %cst_14 {dimension_numbers = #tpu.dot_dimension_numbers<[2], [1], [1], [2], [0, 0, 0, 1, 1, 2], [0], [0]>} : vector<4x8x128xf32>, vector<4x128x32xf32>, vector<4x8x32xf32> -> vector<4x8x32xf32>
    "tpu.trace_stop"() : () -> ()
    %c0_15 = arith.constant 0 : index
    %c0_16 = arith.constant 0 : index
    %c0_17 = arith.constant 0 : index
    %c0_18 = arith.constant 0 : index
    %17 = vector.load %arg9[%c0_15, %c0_16, %c0_17, %c0_18] : memref<1x4x1x32xf32, #tpu.memory_space<vmem>>, vector<1x4x1x32xf32>
    %18 = vector.shape_cast %17 : vector<1x4x1x32xf32> to vector<4x1x32xf32>
    %19 = vector.broadcast %18 : vector<4x1x32xf32> to vector<4x8x32xf32>
    %20 = arith.addf %16, %19 : vector<4x8x32xf32>
    %c0_19 = arith.constant 0 : index
    %c0_20 = arith.constant 0 : index
    %c0_21 = arith.constant 0 : index
    %c0_22 = arith.constant 0 : index
    %21 = vector.load %arg10[%c0_19, %c0_20, %c0_21, %c0_22] : memref<1x4x128x32xf32, #tpu.memory_space<vmem>>, vector<1x4x128x32xf32>
    %22 = vector.shape_cast %21 : vector<1x4x128x32xf32> to vector<4x128x32xf32>
    "tpu.trace_start"() <{level = 10 : i32, message = "hsk,hkd->hsd"}> : () -> ()
    %cst_23 = arith.constant dense<0.000000e+00> : vector<4x8x32xf32>
    %23 = tpu.matmul %6, %22, %cst_23 {dimension_numbers = #tpu.dot_dimension_numbers<[2], [1], [1], [2], [0, 0, 0, 1, 1, 2], [0], [0]>} : vector<4x8x128xf32>, vector<4x128x32xf32>, vector<4x8x32xf32> -> vector<4x8x32xf32>
    "tpu.trace_stop"() : () -> ()
    %c0_24 = arith.constant 0 : index
    %c0_25 = arith.constant 0 : index
    %c0_26 = arith.constant 0 : index
    %c0_27 = arith.constant 0 : index
    %24 = vector.load %arg11[%c0_24, %c0_25, %c0_26, %c0_27] : memref<1x4x1x32xf32, #tpu.memory_space<vmem>>, vector<1x4x1x32xf32>
    %25 = vector.shape_cast %24 : vector<1x4x1x32xf32> to vector<4x1x32xf32>
    %26 = vector.broadcast %25 : vector<4x1x32xf32> to vector<4x8x32xf32>
    %27 = arith.addf %23, %26 : vector<4x8x32xf32>
    %cst_28 = arith.constant 0.176776692 : f32
    %28 = vector.broadcast %cst_28 : f32 to vector<4x8x32xf32>
    %29 = arith.mulf %13, %28 : vector<4x8x32xf32>
    "tpu.trace_start"() <{level = 10 : i32, message = "hqd,hkd->hqk"}> : () -> ()
    %cst_29 = arith.constant dense<0.000000e+00> : vector<4x8x8xf32>
    %30 = tpu.matmul %29, %20, %cst_29 {dimension_numbers = #tpu.dot_dimension_numbers<[2], [2], [1], [1], [0, 0, 0, 1, 1, 1], [0], [0]>} : vector<4x8x32xf32>, vector<4x8x32xf32>, vector<4x8x8xf32> -> vector<4x8x8xf32>
    "tpu.trace_stop"() : () -> ()
    %c0_30 = arith.constant 0 : index
    %c0_31 = arith.constant 0 : index
    %c0_32 = arith.constant 0 : index
    %c0_33 = arith.constant 0 : index
    %31 = vector.load %arg3[%c0_30, %c0_31, %c0_32, %c0_33] : memref<1x1x1x8xf32, #tpu.memory_space<vmem>>, vector<1x1x1x8xf32>
    %32 = vector.shape_cast %31 : vector<1x1x1x8xf32> to vector<1x1x8xf32>
    %33 = vector.broadcast %32 : vector<1x1x8xf32> to vector<4x8x8xf32>
    %34 = arith.addf %30, %33 : vector<4x8x8xf32>
    %cst_34 = arith.constant dense<0xFF800000> : vector<4x8xf32>
    %35 = vector.multi_reduction <maximumf>, %34, %cst_34 [2] : vector<4x8x8xf32> to vector<4x8xf32>
    %36 = vector.shape_cast %35 : vector<4x8xf32> to vector<4x8x1xf32>
    %37 = vector.broadcast %36 : vector<4x8x1xf32> to vector<4x8x8xf32>
    %38 = arith.subf %34, %37 : vector<4x8x8xf32>
    %39 = math.exp %38 : vector<4x8x8xf32>
    %cst_35 = arith.constant dense<0.000000e+00> : vector<4x8xf32>
    %40 = vector.multi_reduction <add>, %39, %cst_35 [2] : vector<4x8x8xf32> to vector<4x8xf32>
    %41 = vector.shape_cast %40 : vector<4x8xf32> to vector<4x8x1xf32>
    %42 = tpu.reciprocal %41 {approx = true} : vector<4x8x1xf32> -> vector<4x8x1xf32>
    %43 = vector.broadcast %42 : vector<4x8x1xf32> to vector<4x8x8xf32>
    %44 = arith.mulf %39, %43 : vector<4x8x8xf32>
    "tpu.trace_start"() <{level = 10 : i32, message = "hqk,hkd->hqd"}> : () -> ()
    %cst_36 = arith.constant dense<0.000000e+00> : vector<4x8x32xf32>
    %45 = tpu.matmul %44, %27, %cst_36 {dimension_numbers = #tpu.dot_dimension_numbers<[2], [1], [1], [2], [0, 0, 0, 1, 1, 2], [0], [0]>} : vector<4x8x8xf32>, vector<4x8x32xf32>, vector<4x8x32xf32> -> vector<4x8x32xf32>
    "tpu.trace_stop"() : () -> ()
    %c0_37 = arith.constant 0 : index
    %c0_38 = arith.constant 0 : index
    %c0_39 = arith.constant 0 : index
    %c0_40 = arith.constant 0 : index
    %46 = vector.load %arg12[%c0_37, %c0_38, %c0_39, %c0_40] : memref<1x4x32x128xf32, #tpu.memory_space<vmem>>, vector<1x4x32x128xf32>
    %47 = vector.shape_cast %46 : vector<1x4x32x128xf32> to vector<4x32x128xf32>
    "tpu.trace_start"() <{level = 10 : i32, message = "hqd,hdm->hqm"}> : () -> ()
    %cst_41 = arith.constant dense<0.000000e+00> : vector<4x8x128xf32>
    %48 = tpu.matmul %45, %47, %cst_41 {dimension_numbers = #tpu.dot_dimension_numbers<[2], [1], [1], [2], [0, 0, 0, 1, 1, 2], [0], [0]>} : vector<4x8x32xf32>, vector<4x32x128xf32>, vector<4x8x128xf32> -> vector<4x8x128xf32>
    "tpu.trace_stop"() : () -> ()
    %cst_42 = arith.constant dense<0.000000e+00> : vector<8x128xf32>
    %49 = vector.multi_reduction <add>, %48, %cst_42 [0] : vector<4x8x128xf32> to vector<8x128xf32>
    %c0_43 = arith.constant 0 : index
    %c0_44 = arith.constant 0 : index
    %c0_45 = arith.constant 0 : index
    %50 = vector.load %arg13[%c0_43, %c0_44, %c0_45] : memref<1x1x128xf32, #tpu.memory_space<vmem>>, vector<1x1x128xf32>
    %51 = vector.shape_cast %50 : vector<1x1x128xf32> to vector<1x128xf32>
    %52 = vector.broadcast %51 : vector<1x128xf32> to vector<8x128xf32>
    %53 = arith.addf %49, %52 : vector<8x128xf32>
    %54 = arith.addf %3, %53 : vector<8x128xf32>
    %c0_46 = arith.constant 0 : index
    %c0_47 = arith.constant 0 : index
    %c0_48 = arith.constant 0 : index
    %55 = vector.load %arg14[%c0_46, %c0_47, %c0_48] : memref<1x1x128xf32, #tpu.memory_space<vmem>>, vector<1x1x128xf32>
    %56 = vector.shape_cast %55 : vector<1x1x128xf32> to vector<1x128xf32>
    %c0_49 = arith.constant 0 : index
    %c0_50 = arith.constant 0 : index
    %c0_51 = arith.constant 0 : index
    %57 = vector.load %arg15[%c0_49, %c0_50, %c0_51] : memref<1x1x128xf32, #tpu.memory_space<vmem>>, vector<1x1x128xf32>
    %58 = vector.shape_cast %57 : vector<1x1x128xf32> to vector<1x128xf32>
    %cst_52 = arith.constant dense<0.000000e+00> : vector<8xf32>
    %59 = vector.multi_reduction <add>, %54, %cst_52 [1] : vector<8x128xf32> to vector<8xf32>
    %60 = vector.shape_cast %59 : vector<8xf32> to vector<8x1xf32>
    %cst_53 = arith.constant 1.280000e+02 : f32
    %61 = vector.broadcast %cst_53 : f32 to vector<8x1xf32>
    %62 = arith.divf %60, %61 : vector<8x1xf32>
    %63 = vector.broadcast %62 : vector<8x1xf32> to vector<8x128xf32>
    %64 = arith.subf %54, %63 : vector<8x128xf32>
    %65 = arith.mulf %64, %64 : vector<8x128xf32>
    %cst_54 = arith.constant dense<0.000000e+00> : vector<8xf32>
    %66 = vector.multi_reduction <add>, %65, %cst_54 [1] : vector<8x128xf32> to vector<8xf32>
    %67 = vector.shape_cast %66 : vector<8xf32> to vector<8x1xf32>
    %cst_55 = arith.constant 1.280000e+02 : f32
    %68 = vector.broadcast %cst_55 : f32 to vector<8x1xf32>
    %69 = arith.divf %67, %68 : vector<8x1xf32>
    %70 = vector.broadcast %62 : vector<8x1xf32> to vector<8x128xf32>
    %71 = arith.subf %54, %70 : vector<8x128xf32>
    %cst_56 = arith.constant 9.99999996E-13 : f32
    %72 = vector.broadcast %cst_56 : f32 to vector<8x1xf32>
    %73 = arith.addf %69, %72 : vector<8x1xf32>
    %74 = math.rsqrt %73 : vector<8x1xf32>
    %75 = vector.broadcast %74 : vector<8x1xf32> to vector<8x128xf32>
    %76 = arith.mulf %71, %75 : vector<8x128xf32>
    %77 = vector.broadcast %56 : vector<1x128xf32> to vector<8x128xf32>
    %78 = arith.mulf %76, %77 : vector<8x128xf32>
    %79 = vector.broadcast %58 : vector<1x128xf32> to vector<8x128xf32>
    %80 = arith.addf %78, %79 : vector<8x128xf32>
    %c0_57 = arith.constant 0 : index
    %c0_58 = arith.constant 0 : index
    %c0_59 = arith.constant 0 : index
    %81 = vector.load %arg16[%c0_57, %c0_58, %c0_59] : memref<1x128x256xf32, #tpu.memory_space<vmem>>, vector<1x128x256xf32>
    %82 = vector.shape_cast %81 : vector<1x128x256xf32> to vector<128x256xf32>
    %cst_60 = arith.constant dense<0.000000e+00> : vector<8x256xf32>
    %83 = tpu.matmul %80, %82, %cst_60 {dimension_numbers = #tpu.dot_dimension_numbers<[1], [0], [0], [1], [0, 0, 1, 1], [], []>} : vector<8x128xf32>, vector<128x256xf32>, vector<8x256xf32> -> vector<8x256xf32>
    %c0_61 = arith.constant 0 : index
    %c0_62 = arith.constant 0 : index
    %c0_63 = arith.constant 0 : index
    %84 = vector.load %arg17[%c0_61, %c0_62, %c0_63] : memref<1x1x256xf32, #tpu.memory_space<vmem>>, vector<1x1x256xf32>
    %85 = vector.shape_cast %84 : vector<1x1x256xf32> to vector<1x256xf32>
    %86 = vector.broadcast %85 : vector<1x256xf32> to vector<8x256xf32>
    %87 = arith.addf %83, %86 : vector<8x256xf32>
    %88 = arith.mulf %87, %87 : vector<8x256xf32>
    %89 = arith.mulf %87, %88 : vector<8x256xf32>
    %cst_64 = arith.constant 4.471500e-02 : f32
    %90 = vector.broadcast %cst_64 : f32 to vector<8x256xf32>
    %91 = arith.mulf %90, %89 : vector<8x256xf32>
    %92 = arith.addf %87, %91 : vector<8x256xf32>
    %cst_65 = arith.constant 0.797884583 : f32
    %93 = vector.broadcast %cst_65 : f32 to vector<8x256xf32>
    %94 = arith.mulf %93, %92 : vector<8x256xf32>
    %95 = math.tanh %94 : vector<8x256xf32>
    %cst_66 = arith.constant 1.000000e+00 : f32
    %96 = vector.broadcast %cst_66 : f32 to vector<8x256xf32>
    %97 = arith.addf %96, %95 : vector<8x256xf32>
    %cst_67 = arith.constant 5.000000e-01 : f32
    %98 = vector.broadcast %cst_67 : f32 to vector<8x256xf32>
    %99 = arith.mulf %98, %97 : vector<8x256xf32>
    %100 = arith.mulf %87, %99 : vector<8x256xf32>
    %c0_68 = arith.constant 0 : index
    %c0_69 = arith.constant 0 : index
    %c0_70 = arith.constant 0 : index
    %101 = vector.load %arg18[%c0_68, %c0_69, %c0_70] : memref<1x256x128xf32, #tpu.memory_space<vmem>>, vector<1x256x128xf32>
    %102 = vector.shape_cast %101 : vector<1x256x128xf32> to vector<256x128xf32>
    %cst_71 = arith.constant dense<0.000000e+00> : vector<8x128xf32>
    %103 = tpu.matmul %100, %102, %cst_71 {dimension_numbers = #tpu.dot_dimension_numbers<[1], [0], [0], [1], [0, 0, 1, 1], [], []>} : vector<8x256xf32>, vector<256x128xf32>, vector<8x128xf32> -> vector<8x128xf32>
    %c0_72 = arith.constant 0 : index
    %c0_73 = arith.constant 0 : index
    %c0_74 = arith.constant 0 : index
    %104 = vector.load %arg19[%c0_72, %c0_73, %c0_74] : memref<1x1x128xf32, #tpu.memory_space<vmem>>, vector<1x1x128xf32>
    %105 = vector.shape_cast %104 : vector<1x1x128xf32> to vector<1x128xf32>
    %106 = vector.broadcast %105 : vector<1x128xf32> to vector<8x128xf32>
    %107 = arith.addf %103, %106 : vector<8x128xf32>
    %108 = arith.addf %80, %107 : vector<8x128xf32>
    %c0_75 = arith.constant 0 : index
    %c0_76 = arith.constant 0 : index
    %c0_77 = arith.constant 0 : index
    %109 = vector.load %arg20[%c0_75, %c0_76, %c0_77] : memref<1x1x128xf32, #tpu.memory_space<vmem>>, vector<1x1x128xf32>
    %110 = vector.shape_cast %109 : vector<1x1x128xf32> to vector<1x128xf32>
    %c0_78 = arith.constant 0 : index
    %c0_79 = arith.constant 0 : index
    %c0_80 = arith.constant 0 : index
    %111 = vector.load %arg21[%c0_78, %c0_79, %c0_80] : memref<1x1x128xf32, #tpu.memory_space<vmem>>, vector<1x1x128xf32>
    %112 = vector.shape_cast %111 : vector<1x1x128xf32> to vector<1x128xf32>
    %cst_81 = arith.constant dense<0.000000e+00> : vector<8xf32>
    %113 = vector.multi_reduction <add>, %108, %cst_81 [1] : vector<8x128xf32> to vector<8xf32>
    %114 = vector.shape_cast %113 : vector<8xf32> to vector<8x1xf32>
    %cst_82 = arith.constant 1.280000e+02 : f32
    %115 = vector.broadcast %cst_82 : f32 to vector<8x1xf32>
    %116 = arith.divf %114, %115 : vector<8x1xf32>
    %117 = vector.broadcast %116 : vector<8x1xf32> to vector<8x128xf32>
    %118 = arith.subf %108, %117 : vector<8x128xf32>
    %119 = arith.mulf %118, %118 : vector<8x128xf32>
    %cst_83 = arith.constant dense<0.000000e+00> : vector<8xf32>
    %120 = vector.multi_reduction <add>, %119, %cst_83 [1] : vector<8x128xf32> to vector<8xf32>
    %121 = vector.shape_cast %120 : vector<8xf32> to vector<8x1xf32>
    %cst_84 = arith.constant 1.280000e+02 : f32
    %122 = vector.broadcast %cst_84 : f32 to vector<8x1xf32>
    %123 = arith.divf %121, %122 : vector<8x1xf32>
    %124 = vector.broadcast %116 : vector<8x1xf32> to vector<8x128xf32>
    %125 = arith.subf %108, %124 : vector<8x128xf32>
    %cst_85 = arith.constant 9.99999996E-13 : f32
    %126 = vector.broadcast %cst_85 : f32 to vector<8x1xf32>
    %127 = arith.addf %123, %126 : vector<8x1xf32>
    %128 = math.rsqrt %127 : vector<8x1xf32>
    %129 = vector.broadcast %128 : vector<8x1xf32> to vector<8x128xf32>
    %130 = arith.mulf %125, %129 : vector<8x128xf32>
    %131 = vector.broadcast %110 : vector<1x128xf32> to vector<8x128xf32>
    %132 = arith.mulf %130, %131 : vector<8x128xf32>
    %133 = vector.broadcast %112 : vector<1x128xf32> to vector<8x128xf32>
    %134 = arith.addf %132, %133 : vector<8x128xf32>
    %c0_86 = arith.constant 0 : index
    %c0_87 = arith.constant 0 : index
    %135 = vector.load %arg27[%c0_86, %c0_87] : memref<8x128xf32, #tpu.memory_space<vmem>>, vector<8x128xf32>
    tpu.vector_store %arg27[%c0_86, %c0_87], %134 {strides = array<i32>} : memref<8x128xf32, #tpu.memory_space<vmem>>, vector<8x128xf32>,
    %c1_i32 = arith.constant 1 : i32
    %136 = arith.cmpi eq, %arg1, %c1_i32 : i32
    %137 = arith.extui %136 : i1 to i32
    %c0_i32_88 = arith.constant 0 : i32
    %138 = arith.cmpi ne, %137, %c0_i32_88 : i32
    scf.if %138 {
      %139 = vector.extract_strided_slice %134 {offsets = [0, 0], sizes = [1, 128], strides = [1, 1]} : vector<8x128xf32> to vector<1x128xf32>
      %c0_89 = arith.constant 0 : index
      %c0_90 = arith.constant 0 : index
      %140 = vector.load %arg22[%c0_89, %c0_90] : memref<128x128xf32, #tpu.memory_space<vmem>>, vector<128x128xf32>
      %cst_91 = arith.constant dense<0.000000e+00> : vector<1x128xf32>
      %141 = tpu.matmul %139, %140, %cst_91 {dimension_numbers = #tpu.dot_dimension_numbers<[1], [0], [0], [1], [0, 0, 1, 1], [], []>} : vector<1x128xf32>, vector<128x128xf32>, vector<1x128xf32> -> vector<1x128xf32>
      %c0_92 = arith.constant 0 : index
      %c0_93 = arith.constant 0 : index
      %142 = vector.load %arg23[%c0_92, %c0_93] : memref<1x128xf32, #tpu.memory_space<vmem>>, vector<1x128xf32>
      %143 = arith.addf %141, %142 : vector<1x128xf32>
      %cst_94 = arith.constant 0.000000e+00 : f32
      %144 = vector.broadcast %cst_94 : f32 to vector<1x128xf32>
      %145 = arith.maximumf %143, %144 : vector<1x128xf32>
      %c0_95 = arith.constant 0 : index
      %c0_96 = arith.constant 0 : index
      %146 = vector.load %arg24[%c0_95, %c0_96] : memref<128x128xf32, #tpu.memory_space<vmem>>, vector<128x128xf32>
      %cst_97 = arith.constant dense<0.000000e+00> : vector<1x128xf32>
      %147 = tpu.matmul %145, %146, %cst_97 {dimension_numbers = #tpu.dot_dimension_numbers<[1], [0], [0], [1], [0, 0, 1, 1], [], []>} : vector<1x128xf32>, vector<128x128xf32>, vector<1x128xf32> -> vector<1x128xf32>
      %c0_98 = arith.constant 0 : index
      %c0_99 = arith.constant 0 : index
      %148 = vector.load %arg25[%c0_98, %c0_99] : memref<1x128xf32, #tpu.memory_space<vmem>>, vector<1x128xf32>
      %149 = arith.addf %147, %148 : vector<1x128xf32>
      %c0_100 = arith.constant 0 : index
      %c0_101 = arith.constant 0 : index
      %c0_102 = arith.constant 0 : index
      %150 = vector.load %arg26[%c0_100, %c0_101, %c0_102] : memref<1x1x128xf32, #tpu.memory_space<vmem>>, vector<1x1x128xf32>
      %151 = vector.shape_cast %150 : vector<1x1x128xf32> to vector<1x128xf32>
      %152 = vector.shape_cast %149 : vector<1x128xf32> to vector<1x1x128xf32>
      tpu.vector_store %arg26[%c0_100, %c0_101, %c0_102], %152 {strides = array<i32>} : memref<1x1x128xf32, #tpu.memory_space<vmem>>, vector<1x1x128xf32>,
    } else {
    }
    return
  }
  func.func @transform_0(%arg0: i32, %arg1: i32) -> (i32, i32, i32) {
    %c0_i32 = arith.constant 0 : i32
    %c0_i32_0 = arith.constant 0 : i32
    %c0_i32_1 = arith.constant 0 : i32
    return %arg0, %c0_i32, %c0_i32_0 : i32, i32, i32
  }
  func.func @transform_1(%arg0: i32, %arg1: i32) -> (i32, i32, i32, i32) {
    %c0_i32 = arith.constant 0 : i32
    %c0_i32_0 = arith.constant 0 : i32
    %c0_i32_1 = arith.constant 0 : i32
    %c0_i32_2 = arith.constant 0 : i32
    return %arg0, %c0_i32, %c0_i32_0, %c0_i32_1 : i32, i32, i32, i32
  }
  func.func @transform_2(%arg0: i32, %arg1: i32) -> (i32, i32) {
    %c0_i32 = arith.constant 0 : i32
    %c0_i32_0 = arith.constant 0 : i32
    %c0_i32_1 = arith.constant 0 : i32
    return %c0_i32, %c0_i32_0 : i32, i32
  }
  func.func @transform_3(%arg0: i32, %arg1: i32) -> (i32, i32) {
    %c0_i32 = arith.constant 0 : i32
    %c0_i32_0 = arith.constant 0 : i32
    %c0_i32_1 = arith.constant 0 : i32
    return %c0_i32, %c0_i32_0 : i32, i32
  }
  func.func @transform_4(%arg0: i32, %arg1: i32) -> (i32, i32, i32, i32) {
    %c0_i32 = arith.constant 0 : i32
    %c0_i32_0 = arith.constant 0 : i32
    %c0_i32_1 = arith.constant 0 : i32
    %c0_i32_2 = arith.constant 0 : i32
    return %arg1, %c0_i32, %c0_i32_0, %c0_i32_1 : i32, i32, i32, i32
  }
  func.func @transform_5(%arg0: i32, %arg1: i32) -> (i32, i32, i32, i32) {
    %c0_i32 = arith.constant 0 : i32
    %c0_i32_0 = arith.constant 0 : i32
    %c0_i32_1 = arith.constant 0 : i32
    %c0_i32_2 = arith.constant 0 : i32
    return %arg1, %c0_i32, %c0_i32_0, %c0_i32_1 : i32, i32, i32, i32
  }
  func.func @transform_6(%arg0: i32, %arg1: i32) -> (i32, i32, i32, i32) {
    %c0_i32 = arith.constant 0 : i32
    %c0_i32_0 = arith.constant 0 : i32
    %c0_i32_1 = arith.constant 0 : i32
    %c0_i32_2 = arith.constant 0 : i32
    return %arg1, %c0_i32, %c0_i32_0, %c0_i32_1 : i32, i32, i32, i32
  }
  func.func @transform_7(%arg0: i32, %arg1: i32) -> (i32, i32, i32, i32) {
    %c0_i32 = arith.constant 0 : i32
    %c0_i32_0 = arith.constant 0 : i32
    %c0_i32_1 = arith.constant 0 : i32
    %c0_i32_2 = arith.constant 0 : i32
    return %arg1, %c0_i32, %c0_i32_0, %c0_i32_1 : i32, i32, i32, i32
  }
  func.func @transform_8(%arg0: i32, %arg1: i32) -> (i32, i32, i32, i32) {
    %c0_i32 = arith.constant 0 : i32
    %c0_i32_0 = arith.constant 0 : i32
    %c0_i32_1 = arith.constant 0 : i32
    %c0_i32_2 = arith.constant 0 : i32
    return %arg1, %c0_i32, %c0_i32_0, %c0_i32_1 : i32, i32, i32, i32
  }
  func.func @transform_9(%arg0: i32, %arg1: i32) -> (i32, i32, i32, i32) {
    %c0_i32 = arith.constant 0 : i32
    %c0_i32_0 = arith.constant 0 : i32
    %c0_i32_1 = arith.constant 0 : i32
    %c0_i32_2 = arith.constant 0 : i32
    return %arg1, %c0_i32, %c0_i32_0, %c0_i32_1 : i32, i32, i32, i32
  }
  func.func @transform_10(%arg0: i32, %arg1: i32) -> (i32, i32, i32, i32) {
    %c0_i32 = arith.constant 0 : i32
    %c0_i32_0 = arith.constant 0 : i32
    %c0_i32_1 = arith.constant 0 : i32
    %c0_i32_2 = arith.constant 0 : i32
    return %arg1, %c0_i32, %c0_i32_0, %c0_i32_1 : i32, i32, i32, i32
  }
  func.func @transform_11(%arg0: i32, %arg1: i32) -> (i32, i32, i32) {
    %c0_i32 = arith.constant 0 : i32
    %c0_i32_0 = arith.constant 0 : i32
    %c0_i32_1 = arith.constant 0 : i32
    return %arg1, %c0_i32, %c0_i32_0 : i32, i32, i32
  }
  func.func @transform_12(%arg0: i32, %arg1: i32) -> (i32, i32, i32) {
    %c0_i32 = arith.constant 0 : i32
    %c0_i32_0 = arith.constant 0 : i32
    %c0_i32_1 = arith.constant 0 : i32
    return %arg1, %c0_i32, %c0_i32_0 : i32, i32, i32
  }
  func.func @transform_13(%arg0: i32, %arg1: i32) -> (i32, i32, i32) {
    %c0_i32 = arith.constant 0 : i32
    %c0_i32_0 = arith.constant 0 : i32
    %c0_i32_1 = arith.constant 0 : i32
    return %arg1, %c0_i32, %c0_i32_0 : i32, i32, i32
  }
  func.func @transform_14(%arg0: i32, %arg1: i32) -> (i32, i32, i32) {
    %c0_i32 = arith.constant 0 : i32
    %c0_i32_0 = arith.constant 0 : i32
    %c0_i32_1 = arith.constant 0 : i32
    return %arg1, %c0_i32, %c0_i32_0 : i32, i32, i32
  }
  func.func @transform_15(%arg0: i32, %arg1: i32) -> (i32, i32, i32) {
    %c0_i32 = arith.constant 0 : i32
    %c0_i32_0 = arith.constant 0 : i32
    %c0_i32_1 = arith.constant 0 : i32
    return %arg1, %c0_i32, %c0_i32_0 : i32, i32, i32
  }
  func.func @transform_16(%arg0: i32, %arg1: i32) -> (i32, i32, i32) {
    %c0_i32 = arith.constant 0 : i32
    %c0_i32_0 = arith.constant 0 : i32
    %c0_i32_1 = arith.constant 0 : i32
    return %arg1, %c0_i32, %c0_i32_0 : i32, i32, i32
  }
  func.func @transform_17(%arg0: i32, %arg1: i32) -> (i32, i32, i32) {
    %c0_i32 = arith.constant 0 : i32
    %c0_i32_0 = arith.constant 0 : i32
    %c0_i32_1 = arith.constant 0 : i32
    return %arg1, %c0_i32, %c0_i32_0 : i32, i32, i32
  }
  func.func @transform_18(%arg0: i32, %arg1: i32) -> (i32, i32, i32) {
    %c0_i32 = arith.constant 0 : i32
    %c0_i32_0 = arith.constant 0 : i32
    %c0_i32_1 = arith.constant 0 : i32
    return %arg1, %c0_i32, %c0_i32_0 : i32, i32, i32
  }
  func.func @transform_19(%arg0: i32, %arg1: i32) -> (i32, i32, i32) {
    %c0_i32 = arith.constant 0 : i32
    %c0_i32_0 = arith.constant 0 : i32
    %c0_i32_1 = arith.constant 0 : i32
    return %arg1, %c0_i32, %c0_i32_0 : i32, i32, i32
  }
  func.func @transform_20(%arg0: i32, %arg1: i32) -> (i32, i32) {
    %c0_i32 = arith.constant 0 : i32
    %c0_i32_0 = arith.constant 0 : i32
    %c0_i32_1 = arith.constant 0 : i32
    return %c0_i32, %c0_i32_0 : i32, i32
  }
  func.func @transform_21(%arg0: i32, %arg1: i32) -> (i32, i32) {
    %c0_i32 = arith.constant 0 : i32
    %c0_i32_0 = arith.constant 0 : i32
    %c0_i32_1 = arith.constant 0 : i32
    return %c0_i32, %c0_i32_0 : i32, i32
  }
  func.func @transform_22(%arg0: i32, %arg1: i32) -> (i32, i32) {
    %c0_i32 = arith.constant 0 : i32
    %c0_i32_0 = arith.constant 0 : i32
    %c0_i32_1 = arith.constant 0 : i32
    return %c0_i32, %c0_i32_0 : i32, i32
  }
  func.func @transform_23(%arg0: i32, %arg1: i32) -> (i32, i32) {
    %c0_i32 = arith.constant 0 : i32
    %c0_i32_0 = arith.constant 0 : i32
    %c0_i32_1 = arith.constant 0 : i32
    return %c0_i32, %c0_i32_0 : i32, i32
  }
  func.func @transform_24(%arg0: i32, %arg1: i32) -> (i32, i32, i32) {
    %c0_i32 = arith.constant 0 : i32
    %c0_i32_0 = arith.constant 0 : i32
    %c0_i32_1 = arith.constant 0 : i32
    return %arg0, %c0_i32, %c0_i32_0 : i32, i32, i32
  }
}

</mosaic_0001>

<bundles_post_ra>
// kernel: pallas_forward.1
= control target key start
LH: loop header
LB: loop body
LE: loop exit
PB: predicated region body
PF: predicated region fallthrough
CT: control target
= control target key end

     0   :  { %s3599_s0 = inlined_call_operand.vmem [shape: f32[2,8,128], index: 0, kind: input, shape index: {}]   ;;  %s3600_s1 = inlined_call_operand.vmem [shape: f32[2,1,1,8], index: 1, kind: input, shape index: {}]   ;;  %s3601_s2 = inlined_call_operand.vmem [shape: f32[1,128], index: 2, kind: input, shape index: {}]   ;;  %s3602_s3 = inlined_call_operand.vmem [shape: f32[1,128], index: 3, kind: input, shape index: {}]   ;;  %s3603_s4 = inlined_call_operand.vmem [shape: f32[2,4,128,32], index: 4, kind: input, shape index: {}]   ;;  %s3604_s5 = inlined_call_operand.vmem [shape: f32[2,4,1,32], index: 5, kind: input, shape index: {}]   ;;  %s3605_s6 = inlined_call_operand.vmem [shape: f32[2,4,128,32], index: 6, kind: input, shape index: {}]   ;;  %s3606_s7 = inlined_call_operand.vmem [shape: f32[2,4,1,32], index: 7, kind: input, shape index: {}]   ;;  %s3607_s8 = inlined_call_operand.vmem [shape: f32[2,4,128,32], index: 8, kind: input, shape index: {}]   ;;  %s3608_s9 = inlined_call_operand.vmem [shape: f32[2,4,1,32], index: 9, kind: input, shape index: {}]   ;;  %s3609_s10 = inlined_call_operand.vmem [shape: f32[2,4,32,128], index: 10, kind: input, shape index: {}]   ;;  %s3610_s11 = inlined_call_operand.vmem [shape: f32[2,1,128], index: 11, kind: input, shape index: {}]   ;;  %s3611_s12 = inlined_call_operand.vmem [shape: f32[2,1,128], index: 12, kind: input, shape index: {}]   ;;  %s3612_s13 = inlined_call_operand.vmem [shape: f32[2,1,128], index: 13, kind: input, shape index: {}]   ;;  %s3613_s14 = inlined_call_operand.vmem [shape: f32[2,128,256], index: 14, kind: input, shape index: {}]   ;;  %s3614_s15 = inlined_call_operand.vmem [shape: f32[2,1,256], index: 15, kind: input, shape index: {}]   ;;  %s3615_s16 = inlined_call_operand.vmem [shape: f32[2,256,128], index: 16, kind: input, shape index: {}]   ;;  %s3616_s17 = inlined_call_operand.vmem [shape: f32[2,1,128], index: 17, kind: input, shape index: {}]   ;;  %s3617_s18 = inlined_call_operand.vmem [shape: f32[2,1,128], index: 18, kind: input, shape index: {}]   ;;  %s3618_s19 = inlined_call_operand.vmem [shape: f32[2,1,128], index: 19, kind: input, shape index: {}]   ;;  %s3619_s20 = inlined_call_operand.vmem [shape: f32[128,128], index: 20, kind: input, shape index: {}]   ;;  %s3620_s21 = inlined_call_operand.vmem [shape: f32[1,128], index: 21, kind: input, shape index: {}]   ;;  %s3621_s22 = inlined_call_operand.vmem [shape: f32[128,128], index: 22, kind: input, shape index: {}]   ;;  %s3622_s23 = inlined_call_operand.vmem [shape: f32[1,128], index: 23, kind: input, shape index: {}]   ;;  %s3623_s24 = inlined_call_operand.hbm [shape: f32[2,1,128], index: 24, kind: output, shape index: {}]  }
   0x1   :  { %3643 = sst [smem:[#allocation22_spill]] %s3599_s0 }
   0x2   :  { %3644 = sst [smem:[#allocation23_spill]] %s3600_s1 }
   0x3   :  { %3645 = sst [smem:[#allocation24_spill]] %s3601_s2 }
   0x4   :  { %3646 = sst [smem:[#allocation25_spill]] %s3602_s3 }
   0x5   :  { %3647 = sst [smem:[#allocation26_spill]] %s3603_s4 }
   0x6   :  { %3648 = sst [smem:[#allocation27_spill]] %s3604_s5 }
   0x7   :  { %3649 = sst [smem:[#allocation28_spill]] %s3605_s6 }
   0x8   :  { %3650 = sst [smem:[#allocation29_spill]] %s3606_s7 }
   0x9   :  { %3651 = sst [smem:[#allocation30_spill]] %s3607_s8 }
   0xa   :  { %3652 = sst [smem:[#allocation31_spill]] %s3608_s9 }
   0xb   :  { %3653 = sst [smem:[#allocation32_spill]] %s3609_s10 }
   0xc   :  { %3654 = sst [smem:[#allocation33_spill]] %s3611_s12 }
   0xd   :  { %3655 = sst [smem:[#allocation34_spill]] %s3612_s13 }
   0xe   :  { %3656 = sst [smem:[#allocation35_spill]] %s3613_s14 }
   0xf   :  { %3657 = sst [smem:[#allocation36_spill]] %s3617_s18 }
  0x10   :  { %3658 = sst [smem:[#allocation37_spill]] %s3618_s19 }
  0x11   :  { %3659 = sst [smem:[#allocation38_spill]] %s3619_s20 }
  0x12   :  { %3660 = sst [smem:[#allocation39_spill]] %s3620_s21 }
  0x13   :  { %3661 = sst [smem:[#allocation40_spill]] %s3621_s22 }
  0x14   :  { %3662 = sst [smem:[#allocation41_spill]] %s3622_s23 }
  0x15   :  { %3663 = sst [smem:[#allocation42_spill]] %s3623_s24 }
  0x16   :  { %29 = vsyncpa [#allocation4], 0 }
  0x17   :  { %31 = vsyncpa [#allocation4 + $0x1], 0  ;;  %s2899_s5 = smov 0   ;;  %s2901_s26 = smov 0  }
  0x18   :  { %s2903_s27 = smov 0   ;;  %s2905_s28 = smov 0  }
  0x19   :  { %s2907_s6 = smov 0   ;;  %s2909_s2 = smov 0  }
  0x1a   :  { %s2911_s29 = smov 0   ;;  %s2913_s0 = smov 0  }
  0x1b LB: > { %3664 = sst [smem:[#allocation6_spill]] %s2742_s5  ;;  %s2504_s7 = sadd.s32 4294967295, %s2770_s0   ;;  %s2770_s0 = sphi %s2913_s0, %s37_s0   ;;  %s2766_s29 = sphi %s2911_s29, %s3730_s29   ;;  %s2762_s2 = sphi %s2909_s2, %s3729_s2   ;;  %s2758_s6 = sphi %s2907_s6, %s3728_s6   ;;  %s2754_s28 = sphi %s2905_s28, %s3727_s28   ;;  %s2750_s27 = sphi %s2903_s27, %s3726_s27   ;;  %s2746_s26 = sphi %s2901_s26, %s3732_s26   ;;  %s2742_s5 = sphi %s2899_s5, %s3731_s5  }
  0x1c   : > { %3665 = sst [smem:[#allocation7_spill]] %s2750_s27  ;;  %s2505_s30 = sadd.s32 4294967294, %s2770_s0  }
  0x1d   : > { %3666 = sst [smem:[#allocation8_spill]] %s2754_s28  ;;  %s46_s3 = sadd.s32 1, %s2762_s2 }
  0x1e   : > { %3667 = sst [smem:[#allocation9_spill]] %s2758_s6  ;;  %p47_p0 = scmp.ge.s32.totalorder %s46_s3, 2 }
  0x1f   : > { %3668 = sst [smem:[#allocation10_spill]] %s2762_s2  ;;  %s49_s25 = sadd.s32 1, %s2766_s29 }
  0x20   : > { %3669 = sst [smem:[#allocation11_spill]] %s2766_s29  ;;  %p660_p1 = scmp.ne.s32.totalorder %s2750_s27, %s2746_s26 }
  0x21   : > { %3670 = sst [smem:[#allocation12_spill]] %s2770_s0  ;;  %p661_p2 = scmp.eq.s32.totalorder %s2504_s7, 3 }
  0x22   : > { %s3734_s3 = smov (%p47_p0, %s46_s3), 0  ;;  %s3736_s25 = smov (!%p47_p0, %s49_s25), %s2766_s29 }
  0x23   : > { %3671 = sst [smem:[#allocation13_spill]] %s3734_s3  ;;  %p2948_p3 = por %p661_p2, %p660_p1 }
  0x24   : > { %p666_p4 = scmp.ne.s32.totalorder %s2746_s26, %s2742_s5  ;;  %p51_p5 = scmp.ge.s32.totalorder %s3736_s25, 2 }
  0x25   : > { %s3672_s8 = scalar_select %p2948_p3, 1, 0 }
  0x26   : > { %p667_p6 = scmp.eq.s32.totalorder %s2505_s30, 3  ;;  %p2508_p7 = scmp.ge.s32.totalorder %s2770_s0, 1 }
  0x27   : > { %3673 = sst [smem:[#allocation14_spill]] %s3672_s8  ;;  %p828_p8 = scmp.lt.s32.totalorder %s2770_s0, 5 }
  0x28   : > { %s3738_s25 = smov (%p51_p5, %s3736_s25), 0  ;;  %p2958_p9 = por %p667_p6, %p666_p4 }
  0x29   : > { %3674 = sst [smem:[#allocation15_spill]] %s3738_s25  ;;  %p829_p10 = pnand %p2508_p7, %p828_p8 }
  0x2a   : > { %s3675_s4 = scalar_select %p2958_p9, 1, 0 }
  0x2b   : > { %s647_s1 = ssub.s32 %s2766_s29, %s3738_s25  ;;  %s650_s7 = sadd.s32 1, %s2750_s27 }
  0x2c   : > { %3676 = sst [smem:[#allocation16_spill]] %s3675_s4  ;;  %p648_p11 = scmp.eq.s32.totalorder %s647_s1, 0 }
  0x2d   : > { %832 = sbr.rel (%p829_p10) target bundleno = 2355 (0x933), region = 116 }
  0x2e   : > { %s2966_s3 = scalar_select %p648_p11, %s2750_s27, %s650_s7  }
  0x30   : > { %3677 = sst [smem:[#allocation17_spill]] %s2966_s3 }
  0x32   : > { %p959_p12 = scmp.lt.s32.totalorder %s2758_s6, 1  ;;  %p966_p13 = scmp.lt.s32.totalorder %s2754_s28, 1 }
  0x33   : > { %s3680_s5 = sld [smem:[#allocation22_spill]] }
  0x34   : > { %s2972_s2 = scalar_select %p959_p12, %s2758_s6, 1 }
  0x35   : > { %s2975_s4 = scalar_select %p966_p13, %s2754_s28, 1 }
  0x36   : > { %3678 = sst [smem:[#allocation18_spill]] %s2972_s2  ;;  %s2509_s1 = sshll.u32 %s2972_s2, 3 }
  0x37   : > { %s2546_s8 = sshll.u32 %s2975_s4, 9  ;;  %s3681_s23 = sld [smem:[#allocation26_spill]] }
  0x38   : > { %s2512_s22 = sshll.u32 %s2975_s4, 2  ;;  %s3682_s19 = sld [smem:[#allocation27_spill]] }
  0x39   : > { %s962_s0 = scalar_lea.vmem %s3680_s5, %s2509_s1  ;;  %s3684_s7 = sld [smem:[#allocation28_spill]] }
  0x3a   : > { %s3685_s1 = sld [smem:[#allocation29_spill]]  ;;  %s2549_s25 = sshll.u32 %s2975_s4, 7 }
  0x3b   : > { %s3687_s30 = sld [smem:[#allocation30_spill]]  ;;  %s2523_s28 = sshll.u32 %s2975_s4, 1 }
  0x3c   : > { %s3688_s9 = sld [smem:[#allocation31_spill]]  ;;  %s3045_s5 = scalar_lea.vmem %s3614_s15, %s2523_s28 }
  0x3d   : > { %s2989_s21 = scalar_lea.vmem %s3681_s23, %s2546_s8  ;;  %s3690_s10 = sld [smem:[#allocation32_spill]] }
  0x3e   : > { %s2995_s18 = scalar_lea.vmem %s3682_s19, %s2512_s22  ;;  %s3693_s14 = sld [smem:[#allocation35_spill]] }
  0x3f   : > { %3683 = sst [smem:[#allocation19_spill]] %s2995_s18  ;;  %s3000_s27 = scalar_lea.vmem %s3684_s7, %s2546_s8 }
  0x40   : > { %s3005_s24 = scalar_lea.vmem %s3685_s1, %s2512_s22  ;;  %s1023_s6 = scalar_lea.vmem %s3616_s17, %s2975_s4 }
  0x41   : > { %3686 = sst [smem:[#allocation20_spill]] %s3005_s24  ;;  %s3010_s20 = scalar_lea.vmem %s3687_s30, %s2546_s8 }
  0x42   : > { %s3015_s2 = scalar_lea.vmem %s3688_s9, %s2512_s22  ;;  %s2550_s22 = sshll.u32 %s2975_s4, 8 }
  0x43   : > { %3689 = sst [smem:[#allocation21_spill]] %s3015_s2  ;;  %s3021_s18 = scalar_lea.vmem %s3690_s10, %s2549_s25 }
  0x44   : > { %s3040_s29 = scalar_lea.vmem %s3693_s14, %s2550_s22  ;;  %s3050_s24 = scalar_lea.vmem %s3615_s16, %s2550_s22 }
  0x45   : > { %s3694_s10 = sld [smem:[#allocation36_spill]]  ;;  %s3696_s25 = sand.u32 1, %s2746_s26  }
  0x46   : > { %s3695_s13 = sld [smem:[#allocation37_spill]]  ;;  %s3066_s28 = scalar_lea.vmem [#allocation3], %s3696_s25 }
  0x47   : > { %s3697_s7 = sld [smem:[#allocation8_spill]] }
  0x4b   : > { %s1026_s9 = scalar_lea.vmem %s3694_s10, %s2975_s4 }
  0x4c   : > { %s1029_s12 = scalar_lea.vmem %s3695_s13, %s2975_s4 }
  0x4d   : > { %p2526_p0 = scmp.ne.s32.totalorder %s3697_s7, 0 }
  0x4e   : > { %s3698_s14 = sld [smem:[#allocation24_spill]] (!%p2526_p0) }
  0x4f   : > { %1033 = sbr.rel (%p2526_p0) target bundleno = 352 (0x160), region = 120  ;;  %s3699_s8 = sld [smem:[#allocation25_spill]] (!%p2526_p0) }
  0x54   : > { %v1034_v0 = vld [vmem:[%s962_s0] sm:$0xff]  ;;  %v2772_v1 = vmov 128.0  }
  0x55   : > { %1037 = vadd.xlane.f32.xlu0 %v1034_v0  ;;  %2627 = vrcp.f32 %v2772_v1  ;;  %v2625_v21 = vld [vmem:[%s3698_s14] ss:$0 sm:$0xff] }
  0x56   : > { %v2626_v23 = vld [vmem:[%s3699_s8] ss:$0 sm:$0xff] }
  0x5b   : > { %v2628_v2 = vpop.eup %2627 }
  0x5c   : > { %v1040_v3 = vmul.f32 128.0, %v2628_v2  ;;  %vm1044_vm0 = vweird.f32 %v2628_v2 }
  0x5e   : > { %v1041_v4 = vsub.f32 1.0, %v1040_v3 }
  0x60   : > { %v1042_v5 = vmul.f32 %v2628_v2, %v1041_v4 }
  0x62   : > { %v1043_v6 = vadd.f32 %v2628_v2, %v1042_v5 }
  0x64   : > { %v1045_v7 = vsel %vm1044_vm0, %v2628_v2, %v1043_v6 }
  0xc8   : > { %v1038_v8 = vpop.xlane.xlu0 %1037 }
  0xc9   : > { %v1046_v9 = vmul.f32 %v1045_v7, %v1038_v8 }
  0xcb   : > { %v1047_v10 = vsub.f32 %v1034_v0, %v1046_v9 }
  0xcd   : > { %v1048_v11 = vmul.f32 %v1047_v10, %v1047_v10 }
  0xcf   : > { %1049 = vadd.xlane.f32.xlu0 %v1048_v11 }
 0x142   : > { %v1050_v12 = vpop.xlane.xlu0 %1049 }
 0x143   : > { %v1051_v13 = vmul.f32 %v1050_v12, %v1045_v7 }
 0x145   : > { %v1052_v14 = vadd.f32 1e-12, %v1051_v13 }
 0x147   : > { %2629 = vrsqrt.f32 %v1052_v14  ;;  %vm1059_vm2 = vweird.f32 %v1052_v14 }
 0x14d   : > { %v2630_v15 = vpop.eup %2629 }
 0x14e   : > { %v1054_v16 = vmul.f32 %v2630_v15, %v1052_v14  ;;  %vm1060_vm1 = vweird.f32 %v2630_v15 }
 0x14f   : > { %vm1061_vm3 = vmor %vm1059_vm2, %vm1060_vm1 }
 0x150   : > { %v1055_v17 = vmul.f32 %v2630_v15, %v1054_v16 }
 0x152   : > { %v1056_v18 = vmul.f32 0.5, %v1055_v17 }
 0x154   : > { %v1057_v19 = vsub.f32 1.5, %v1056_v18 }
 0x156   : > { %v1058_v20 = vmul.f32 %v2630_v15, %v1057_v19 }
 0x158   : > { %v1062_v22 = vsel %vm1061_vm3, %v2630_v15, %v1058_v20 }
 0x159   : > { %v1063_v24 = vmul.f32 %v1062_v22, %v1047_v10 }
 0x15b   : > { %v1067_v25 = vmul.f32 %v2625_v21, %v1063_v24 }
 0x15d   : > { %v1071_v26 = vadd.f32 %v2626_v23, %v1067_v25 }
 0x15f   : > { %1072 = vst [vmem:[#allocation2] sm:$0xff] %v1071_v26 }
 0x160 PF: > { %v1089_v27 = vld [vmem:[%s2989_s21 + $0x78] sm:$0xff]  ;;  %v1088_v30 = vld [vmem:[%s2989_s21 + $0x70] sm:$0xff]  ;;  %v1087_v33 = vld [vmem:[%s2989_s21 + $0x68] sm:$0xff]  ;;  %vm1562_vm4 = vcmask 261120   ;;  %s3703_s19 = sld [smem:[#allocation18_spill]]  ;;  %vm1667_vm5 = vcmask 64512   ;;  %s3706_s25 = scalar_lea.vmem %s3610_s11, %s2975_s4 }
 0x161   : > { %v1121_v28 = vld [vmem:[%s2989_s21 + $0x178] sm:$0xff]  ;;  %1154 = vmatpush.msra.mxu0 %v1089_v27  ;;  %v1120_v31 = vld [vmem:[%s2989_s21 + $0x170] sm:$0xff]  ;;  %v1119_v34 = vld [vmem:[%s2989_s21 + $0x168] sm:$0xff]  ;;  %s3704_s23 = sld [smem:[#allocation23_spill]] }
 0x162   : > { %v1137_v29 = vld [vmem:[%s2989_s21 + $0x1f8] sm:$0xff]  ;;  %1194 = vmatpush.msra.mxu2 %v1121_v28  ;;  %v1136_v32 = vld [vmem:[%s2989_s21 + $0x1f0] sm:$0xff]  ;;  %v1135_v35 = vld [vmem:[%s2989_s21 + $0x1e8] sm:$0xff]  ;;  %s3707_s10 = sld [smem:[#allocation33_spill]] }
 0x163   : > { %1214 = vmatpush.msra.mxu3 %v1137_v29  ;;  %1155 = vmatpush.msra.mxu0 %v1088_v30  ;;  %v1086_v36 = vld [vmem:[%s2989_s21 + $0x60] sm:$0xff]  ;;  %v1105_v38 = vld [vmem:[%s2989_s21 + $0xf8] sm:$0xff]  ;;  %v1104_v40 = vld [vmem:[%s2989_s21 + $0xf0] sm:$0xff]  ;;  %s3709_s1 = sld [smem:[#allocation34_spill]] }
 0x164   : > { %1195 = vmatpush.msra.mxu2 %v1120_v31  ;;  %v1118_v37 = vld [vmem:[%s2989_s21 + $0x160] sm:$0xff]  ;;  %v1085_v41 = vld [vmem:[%s2989_s21 + $0x58] sm:$0xff]  ;;  %1174 = vmatpush.msra.mxu1 %v1105_v38  ;;  %v1103_v44 = vld [vmem:[%s2989_s21 + $0xe8] sm:$0xff]  ;;  %s3713_s3 = sld [smem:[#allocation8_spill]] }
 0x165   : > { %1215 = vmatpush.msra.mxu3 %v1136_v32  ;;  %1156 = vmatpush.msra.mxu0 %v1087_v33  ;;  %v1134_v39 = vld [vmem:[%s2989_s21 + $0x1e0] sm:$0xff]  ;;  %v1117_v42 = vld [vmem:[%s2989_s21 + $0x158] sm:$0xff]  ;;  %v1084_v45 = vld [vmem:[%s2989_s21 + $0x50] sm:$0xff] }
 0x166   : > { %1196 = vmatpush.msra.mxu2 %v1119_v34  ;;  %v1133_v43 = vld [vmem:[%s2989_s21 + $0x1d8] sm:$0xff]  ;;  %1175 = vmatpush.msra.mxu1 %v1104_v40  ;;  %v1116_v46 = vld [vmem:[%s2989_s21 + $0x150] sm:$0xff]  ;;  %v1102_v48 = vld [vmem:[%s2989_s21 + $0xe0] sm:$0xff] }
 0x167   : > { %1216 = vmatpush.msra.mxu3 %v1135_v35  ;;  %1157 = vmatpush.msra.mxu0 %v1086_v36  ;;  %v1132_v47 = vld [vmem:[%s2989_s21 + $0x1d0] sm:$0xff]  ;;  %v1083_v49 = vld [vmem:[%s2989_s21 + $0x48] sm:$0xff]  ;;  %v1101_v52 = vld [vmem:[%s2989_s21 + $0xd8] sm:$0xff]  ;;  %s3705_s30 = scalar_lea.vmem %s3704_s23, %s3703_s19 }
 0x168   : > { %1197 = vmatpush.msra.mxu2 %v1118_v37  ;;  %1176 = vmatpush.msra.mxu1 %v1103_v44  ;;  %v1115_v50 = vld [vmem:[%s2989_s21 + $0x148] sm:$0xff]  ;;  %v1082_v53 = vld [vmem:[%s2989_s21 + $0x40] sm:$0xff]  ;;  %v1100_v56 = vld [vmem:[%s2989_s21 + $0xd0] sm:$0xff]  ;;  %s3708_s13 = scalar_lea.vmem %s3707_s10, %s2975_s4 }
 0x169   : > { %1217 = vmatpush.msra.mxu3 %v1134_v39  ;;  %1158 = vmatpush.msra.mxu0 %v1085_v41  ;;  %v1131_v51 = vld [vmem:[%s2989_s21 + $0x1c8] sm:$0xff]  ;;  %v1114_v54 = vld [vmem:[%s2989_s21 + $0x140] sm:$0xff]  ;;  %v1081_v57 = vld [vmem:[%s2989_s21 + $0x38] sm:$0xff]  ;;  %s3710_s8 = scalar_lea.vmem %s3709_s1, %s2975_s4 }
 0x16a   : > { %1198 = vmatpush.msra.mxu2 %v1117_v42  ;;  %1177 = vmatpush.msra.mxu1 %v1102_v48  ;;  %v1130_v55 = vld [vmem:[%s2989_s21 + $0x1c0] sm:$0xff]  ;;  %v1113_v58 = vld [vmem:[%s2989_s21 + $0x138] sm:$0xff]  ;;  %v1099_v60 = vld [vmem:[%s2989_s21 + $0xc8] sm:$0xff]  ;;  %p2543_p1 = scmp.ne.s32.totalorder %s3713_s3, 1 }
 0x16b   : > { %1218 = vmatpush.msra.mxu3 %v1133_v43  ;;  %1159 = vmatpush.msra.mxu0 %v1084_v45  ;;  %v1129_v59 = vld [vmem:[%s2989_s21 + $0x1b8] sm:$0xff]  ;;  %v1080_v61 = vld [vmem:[%s2989_s21 + $0x30] sm:$0xff]  ;;  %v1098_v0 = vld [vmem:[%s2989_s21 + $0xc0] sm:$0xff]  ;;  %s3716_s19 = sld [smem:[#allocation39_spill]] (!%p2543_p1) }
 0x16c   : > { %1199 = vmatpush.msra.mxu2 %v1116_v46  ;;  %1178 = vmatpush.msra.mxu1 %v1101_v52  ;;  %v1112_v62 = vld [vmem:[%s2989_s21 + $0x130] sm:$0xff]  ;;  %v1079_v1 = vld [vmem:[%s2989_s21 + $0x28] sm:$0xff]  ;;  %v1097_v4 = vld [vmem:[%s2989_s21 + $0xb8] sm:$0xff]  ;;  %s3717_s23 = sld [smem:[#allocation41_spill]] (!%p2543_p1) }
 0x16d   : > { %1219 = vmatpush.msra.mxu3 %v1132_v47  ;;  %1160 = vmatpush.msra.mxu0 %v1083_v49  ;;  %v1128_v63 = vld [vmem:[%s2989_s21 + $0x1b0] sm:$0xff]  ;;  %v1111_v2 = vld [vmem:[%s2989_s21 + $0x128] sm:$0xff]  ;;  %v1078_v5 = vld [vmem:[%s2989_s21 + $0x20] sm:$0xff] }
 0x16e   : > { %1200 = vmatpush.msra.mxu2 %v1115_v50  ;;  %1179 = vmatpush.msra.mxu1 %v1100_v56  ;;  %v1127_v3 = vld [vmem:[%s2989_s21 + $0x1a8] sm:$0xff]  ;;  %v1110_v6 = vld [vmem:[%s2989_s21 + $0x120] sm:$0xff]  ;;  %v1096_v8 = vld [vmem:[%s2989_s21 + $0xb0] sm:$0xff] }
 0x16f   : > { %1220 = vmatpush.msra.mxu3 %v1131_v51  ;;  %1161 = vmatpush.msra.mxu0 %v1082_v53  ;;  %v1126_v7 = vld [vmem:[%s2989_s21 + $0x1a0] sm:$0xff]  ;;  %v1077_v9 = vld [vmem:[%s2989_s21 + $0x18] sm:$0xff]  ;;  %v1095_v12 = vld [vmem:[%s2989_s21 + $0xa8] sm:$0xff] }
 0x170   : > { %1201 = vmatpush.msra.mxu2 %v1114_v54  ;;  %1180 = vmatpush.msra.mxu1 %v1099_v60  ;;  %v1109_v10 = vld [vmem:[%s2989_s21 + $0x118] sm:$0xff]  ;;  %v1076_v13 = vld [vmem:[%s2989_s21 + $0x10] sm:$0xff]  ;;  %v1094_v16 = vld [vmem:[%s2989_s21 + $0xa0] sm:$0xff] }
 0x171   : > { %1221 = vmatpush.msra.mxu3 %v1130_v55  ;;  %1162 = vmatpush.msra.mxu0 %v1081_v57  ;;  %v1125_v11 = vld [vmem:[%s2989_s21 + $0x198] sm:$0xff]  ;;  %v1108_v14 = vld [vmem:[%s2989_s21 + $0x110] sm:$0xff]  ;;  %v1075_v17 = vld [vmem:[%s2989_s21 + $0x8] sm:$0xff] }
 0x172   : > { %1202 = vmatpush.msra.mxu2 %v1113_v58  ;;  %1181 = vmatpush.msra.mxu1 %v1098_v0  ;;  %v1124_v15 = vld [vmem:[%s2989_s21 + $0x190] sm:$0xff]  ;;  %v1107_v18 = vld [vmem:[%s2989_s21 + $0x108] sm:$0xff]  ;;  %v1093_v20 = vld [vmem:[%s2989_s21 + $0x98] sm:$0xff] }
 0x173   : > { %1222 = vmatpush.msra.mxu3 %v1129_v59  ;;  %1163 = vmatpush.msra.mxu0 %v1080_v61  ;;  %v1123_v19 = vld [vmem:[%s2989_s21 + $0x188] sm:$0xff]  ;;  %v1074_v21 = vld [vmem:[%s2989_s21] sm:$0xff]  ;;  %v1249_v24 = vld [vmem:[%s3000_s27 + $0x78] sm:$0xff] }
 0x174   : > { %1203 = vmatpush.msra.mxu2 %v1112_v62  ;;  %1182 = vmatpush.msra.mxu1 %v1097_v4  ;;  %v1106_v22 = vld [vmem:[%s2989_s21 + $0x100] sm:$0xff]  ;;  %v1281_v25 = vld [vmem:[%s3000_s27 + $0x178] sm:$0xff]  ;;  %v1248_v27 = vld [vmem:[%s3000_s27 + $0x70] sm:$0xff] }
 0x175   : > { %1223 = vmatpush.msra.mxu3 %v1128_v63  ;;  %1164 = vmatpush.msra.mxu0 %v1079_v1  ;;  %v1122_v23 = vld [vmem:[%s2989_s21 + $0x180] sm:$0xff]  ;;  %v1297_v26 = vld [vmem:[%s3000_s27 + $0x1f8] sm:$0xff]  ;;  %v1092_v28 = vld [vmem:[%s2989_s21 + $0x90] sm:$0xff] }
 0x176   : > { %1204 = vmatpush.msra.mxu2 %v1111_v2  ;;  %1183 = vmatpush.msra.mxu1 %v1096_v8  ;;  %v1280_v29 = vld [vmem:[%s3000_s27 + $0x170] sm:$0xff]  ;;  %v1247_v31 = vld [vmem:[%s3000_s27 + $0x68] sm:$0xff]  ;;  %v1246_v35 = vld [vmem:[%s3000_s27 + $0x60] sm:$0xff] }
 0x177   : > { %1224 = vmatpush.msra.mxu3 %v1127_v3  ;;  %1165 = vmatpush.msra.mxu0 %v1078_v5  ;;  %v1296_v30 = vld [vmem:[%s3000_s27 + $0x1f0] sm:$0xff]  ;;  %v1091_v32 = vld [vmem:[%s2989_s21 + $0x88] sm:$0xff]  ;;  %v1090_v36 = vld [vmem:[%s2989_s21 + $0x80] sm:$0xff]  ;;  %s3700_s21 = sld [smem:[#allocation19_spill]] }
 0x178   : > { %1205 = vmatpush.msra.mxu2 %v1110_v6  ;;  %1184 = vmatpush.msra.mxu1 %v1095_v12  ;;  %v1279_v33 = vld [vmem:[%s3000_s27 + $0x168] sm:$0xff]  ;;  %v1278_v37 = vld [vmem:[%s3000_s27 + $0x160] sm:$0xff]  ;;  %v1245_v39 = vld [vmem:[%s3000_s27 + $0x58] sm:$0xff] }
 0x179   : > { %1225 = vmatpush.msra.mxu3 %v1126_v7  ;;  %1166 = vmatpush.msra.mxu0 %v1077_v9  ;;  %v1295_v34 = vld [vmem:[%s3000_s27 + $0x1e8] sm:$0xff]  ;;  %v1294_v38 = vld [vmem:[%s3000_s27 + $0x1e0] sm:$0xff]  ;;  %v1265_v40 = vld [vmem:[%s3000_s27 + $0xf8] sm:$0xff] }
 0x17a   : > { %1206 = vmatpush.msra.mxu2 %v1109_v10  ;;  %1185 = vmatpush.msra.mxu1 %v1094_v16  ;;  %v1277_v41 = vld [vmem:[%s3000_s27 + $0x158] sm:$0xff]  ;;  %v1244_v43 = vld [vmem:[%s3000_s27 + $0x50] sm:$0xff]  ;;  %v1243_v47 = vld [vmem:[%s3000_s27 + $0x48] sm:$0xff] }
 0x17b   : > { %1226 = vmatpush.msra.mxu3 %v1125_v11  ;;  %1167 = vmatpush.msra.mxu0 %v1076_v13  ;;  %v1293_v42 = vld [vmem:[%s3000_s27 + $0x1d8] sm:$0xff]  ;;  %v1264_v44 = vld [vmem:[%s3000_s27 + $0xf0] sm:$0xff]  ;;  %v1263_v48 = vld [vmem:[%s3000_s27 + $0xe8] sm:$0xff] }
 0x17c   : > { %1207 = vmatpush.msra.mxu2 %v1108_v14  ;;  %1186 = vmatpush.msra.mxu1 %v1093_v20  ;;  %v1276_v45 = vld [vmem:[%s3000_s27 + $0x150] sm:$0xff]  ;;  %v1275_v49 = vld [vmem:[%s3000_s27 + $0x148] sm:$0xff]  ;;  %v1242_v51 = vld [vmem:[%s3000_s27 + $0x40] sm:$0xff] }
 0x17d   : > { %1227 = vmatpush.msra.mxu3 %v1124_v15  ;;  %1168 = vmatpush.msra.mxu0 %v1075_v17  ;;  %v1292_v46 = vld [vmem:[%s3000_s27 + $0x1d0] sm:$0xff]  ;;  %v1291_v50 = vld [vmem:[%s3000_s27 + $0x1c8] sm:$0xff]  ;;  %v1262_v52 = vld [vmem:[%s3000_s27 + $0xe0] sm:$0xff] }
 0x17e   : > { %1208 = vmatpush.msra.mxu2 %v1107_v18  ;;  %1187 = vmatpush.msra.mxu1 %v1092_v28  ;;  %v1274_v53 = vld [vmem:[%s3000_s27 + $0x140] sm:$0xff]  ;;  %v1241_v55 = vld [vmem:[%s3000_s27 + $0x38] sm:$0xff]  ;;  %v1240_v59 = vld [vmem:[%s3000_s27 + $0x30] sm:$0xff] }
 0x17f   : > { %1228 = vmatpush.msra.mxu3 %v1123_v19  ;;  %1169 = vmatpush.msra.mxu0 %v1074_v21  ;;  %v1290_v54 = vld [vmem:[%s3000_s27 + $0x1c0] sm:$0xff]  ;;  %v1261_v56 = vld [vmem:[%s3000_s27 + $0xd8] sm:$0xff]  ;;  %v1260_v60 = vld [vmem:[%s3000_s27 + $0xd0] sm:$0xff] }
 0x180   : > { %1209 = vmatpush.msra.mxu2 %v1106_v22  ;;  %1188 = vmatpush.msra.mxu1 %v1091_v32  ;;  %v1273_v57 = vld [vmem:[%s3000_s27 + $0x138] sm:$0xff]  ;;  %v1272_v61 = vld [vmem:[%s3000_s27 + $0x130] sm:$0xff]  ;;  %v1239_v63 = vld [vmem:[%s3000_s27 + $0x28] sm:$0xff] }
 0x181   : > { %1229 = vmatpush.msra.mxu3 %v1122_v23  ;;  %1314 = vmatpush.msrb.mxu0 %v1249_v24  ;;  %v1289_v58 = vld [vmem:[%s3000_s27 + $0x1b8] sm:$0xff]  ;;  %v1288_v62 = vld [vmem:[%s3000_s27 + $0x1b0] sm:$0xff]  ;;  %v1259_v0 = vld [vmem:[%s3000_s27 + $0xc8] sm:$0xff] }
 0x182   : > { %1354 = vmatpush.msrb.mxu2 %v1281_v25  ;;  %1189 = vmatpush.msra.mxu1 %v1090_v36  ;;  %v1271_v1 = vld [vmem:[%s3000_s27 + $0x128] sm:$0xff]  ;;  %v1238_v3 = vld [vmem:[%s3000_s27 + $0x20] sm:$0xff]  ;;  %v1237_v8 = vld [vmem:[%s3000_s27 + $0x18] sm:$0xff] }
 0x183   : > { %1374 = vmatpush.msrb.mxu3 %v1297_v26  ;;  %1315 = vmatpush.msrb.mxu0 %v1248_v27  ;;  %v1287_v2 = vld [vmem:[%s3000_s27 + $0x1a8] sm:$0xff]  ;;  %v1258_v4 = vld [vmem:[%s3000_s27 + $0xc0] sm:$0xff]  ;;  %v1257_v9 = vld [vmem:[%s3000_s27 + $0xb8] sm:$0xff] }
 0x184   : > { %1355 = vmatpush.msrb.mxu2 %v1280_v29  ;;  %1334 = vmatpush.msrb.mxu1 %v1265_v40  ;;  %v1270_v5 = vld [vmem:[%s3000_s27 + $0x120] sm:$0xff]  ;;  %v1269_v10 = vld [vmem:[%s3000_s27 + $0x118] sm:$0xff]  ;;  %v1236_v12 = vld [vmem:[%s3000_s27 + $0x10] sm:$0xff] }
 0x185   : > { %1375 = vmatpush.msrb.mxu3 %v1296_v30  ;;  %1316 = vmatpush.msrb.mxu0 %v1247_v31  ;;  %v1286_v6 = vld [vmem:[%s3000_s27 + $0x1a0] sm:$0xff]  ;;  %v1285_v11 = vld [vmem:[%s3000_s27 + $0x198] sm:$0xff]  ;;  %v1256_v13 = vld [vmem:[%s3000_s27 + $0xb0] sm:$0xff] }
 0x186   : > { %1356 = vmatpush.msrb.mxu2 %v1279_v33  ;;  %1335 = vmatpush.msrb.mxu1 %v1264_v44  ;;  %v3183_v7 = vld [vmem:[#allocation2] sm:$0xff]  ;;  %v1268_v14 = vld [vmem:[%s3000_s27 + $0x110] sm:$0xff]  ;;  %v1235_v16 = vld [vmem:[%s3000_s27 + $0x8] sm:$0xff] }
 0x187   : > { %1376 = vmatpush.msrb.mxu3 %v1295_v34  ;;  %1317 = vmatpush.msrb.mxu0 %v1246_v35  ;;  %v1284_v15 = vld [vmem:[%s3000_s27 + $0x190] sm:$0xff]  ;;  %v1255_v17 = vld [vmem:[%s3000_s27 + $0xa8] sm:$0xff]  ;;  %v1234_v20 = vld [vmem:[%s3000_s27] sm:$0xff] }
 0x188   : > { %1357 = vmatpush.msrb.mxu2 %v1278_v37  ;;  %1336 = vmatpush.msrb.mxu1 %v1263_v48  ;;  %v1267_v18 = vld [vmem:[%s3000_s27 + $0x108] sm:$0xff]  ;;  %v1254_v21 = vld [vmem:[%s3000_s27 + $0xa0] sm:$0xff]  ;;  %v1253_v24 = vld [vmem:[%s3000_s27 + $0x98] sm:$0xff] }
 0x189   : > { %1377 = vmatpush.msrb.mxu3 %v1294_v38  ;;  %1318 = vmatpush.msrb.mxu0 %v1245_v39  ;;  %v1283_v19 = vld [vmem:[%s3000_s27 + $0x188] sm:$0xff]  ;;  %v1266_v22 = vld [vmem:[%s3000_s27 + $0x100] sm:$0xff]  ;;  %v1409_v25 = vld [vmem:[%s3010_s20 + $0x78] sm:$0xff] }
 0x18a   : > { %1358 = vmatpush.msrb.mxu2 %v1277_v41  ;;  %1337 = vmatpush.msrb.mxu1 %v1262_v52  ;;  %v1282_v23 = vld [vmem:[%s3000_s27 + $0x180] sm:$0xff]  ;;  %v1441_v26 = vld [vmem:[%s3010_s20 + $0x178] sm:$0xff]  ;;  %v1252_v27 = vld [vmem:[%s3000_s27 + $0x90] sm:$0xff] }
 0x18b   : > { %1378 = vmatpush.msrb.mxu3 %v1293_v42  ;;  %1319 = vmatpush.msrb.mxu0 %v1244_v43  ;;  %v1457_v28 = vld [vmem:[%s3010_s20 + $0x1f8] sm:$0xff]  ;;  %v1408_v29 = vld [vmem:[%s3010_s20 + $0x70] sm:$0xff]  ;;  %v1251_v31 = vld [vmem:[%s3000_s27 + $0x88] sm:$0xff] }
 0x18c   : > { %1359 = vmatpush.msrb.mxu2 %v1276_v45  ;;  %1338 = vmatpush.msrb.mxu1 %v1261_v56  ;;  %v1440_v30 = vld [vmem:[%s3010_s20 + $0x170] sm:$0xff]  ;;  %v1407_v33 = vld [vmem:[%s3010_s20 + $0x68] sm:$0xff]  ;;  %v1250_v35 = vld [vmem:[%s3000_s27 + $0x80] sm:$0xff]  ;;  %s3701_s27 = sld [smem:[#allocation20_spill]] }
 0x18d   : > { %1379 = vmatpush.msrb.mxu3 %v1292_v46  ;;  %1320 = vmatpush.msrb.mxu0 %v1243_v47  ;;  %v1456_v32 = vld [vmem:[%s3010_s20 + $0x1f0] sm:$0xff]  ;;  %v1439_v34 = vld [vmem:[%s3010_s20 + $0x168] sm:$0xff]  ;;  %v1406_v37 = vld [vmem:[%s3010_s20 + $0x60] sm:$0xff] }
 0x18e   : > { %1360 = vmatpush.msrb.mxu2 %v1275_v49  ;;  %1339 = vmatpush.msrb.mxu1 %v1260_v60  ;;  %v1455_v36 = vld [vmem:[%s3010_s20 + $0x1e8] sm:$0xff]  ;;  %v1425_v38 = vld [vmem:[%s3010_s20 + $0xf8] sm:$0xff]  ;;  %v1438_v39 = vld [vmem:[%s3010_s20 + $0x160] sm:$0xff] }
 0x18f   : > { %1380 = vmatpush.msrb.mxu3 %v1291_v50  ;;  %1321 = vmatpush.msrb.mxu0 %v1242_v51  ;;  %v1405_v40 = vld [vmem:[%s3010_s20 + $0x58] sm:$0xff]  ;;  %v1454_v41 = vld [vmem:[%s3010_s20 + $0x1e0] sm:$0xff]  ;;  %v1424_v42 = vld [vmem:[%s3010_s20 + $0xf0] sm:$0xff] }
 0x190   : > { %1361 = vmatpush.msrb.mxu2 %v1274_v53  ;;  %1340 = vmatpush.msrb.mxu1 %v1259_v0  ;;  %v1437_v43 = vld [vmem:[%s3010_s20 + $0x158] sm:$0xff]  ;;  %v1404_v44 = vld [vmem:[%s3010_s20 + $0x50] sm:$0xff]  ;;  %v1423_v46 = vld [vmem:[%s3010_s20 + $0xe8] sm:$0xff] }
 0x191   : > { %1381 = vmatpush.msrb.mxu3 %v1290_v54  ;;  %1322 = vmatpush.msrb.mxu0 %v1241_v55  ;;  %v1453_v45 = vld [vmem:[%s3010_s20 + $0x1d8] sm:$0xff]  ;;  %v1436_v47 = vld [vmem:[%s3010_s20 + $0x150] sm:$0xff]  ;;  %v1403_v48 = vld [vmem:[%s3010_s20 + $0x48] sm:$0xff] }
 0x192   : > { %1362 = vmatpush.msrb.mxu2 %v1273_v57  ;;  %1341 = vmatpush.msrb.mxu1 %v1258_v4  ;;  %v1452_v49 = vld [vmem:[%s3010_s20 + $0x1d0] sm:$0xff]  ;;  %v1422_v50 = vld [vmem:[%s3010_s20 + $0xe0] sm:$0xff]  ;;  %v1435_v51 = vld [vmem:[%s3010_s20 + $0x148] sm:$0xff] }
 0x193   : > { %1382 = vmatpush.msrb.mxu3 %v1289_v58  ;;  %1323 = vmatpush.msrb.mxu0 %v1240_v59  ;;  %v1402_v52 = vld [vmem:[%s3010_s20 + $0x40] sm:$0xff]  ;;  %v1451_v53 = vld [vmem:[%s3010_s20 + $0x1c8] sm:$0xff]  ;;  %v1421_v54 = vld [vmem:[%s3010_s20 + $0xd8] sm:$0xff] }
 0x194   : > { %1363 = vmatpush.msrb.mxu2 %v1272_v61  ;;  %1170 = vmatmul.f32.vlgmr.msra.gmra.mxu0 %v3183_v7  ;;  %v1434_v55 = vld [vmem:[%s3010_s20 + $0x140] sm:$0xff]  ;;  %v1401_v56 = vld [vmem:[%s3010_s20 + $0x38] sm:$0xff]  ;;  %v1420_v58 = vld [vmem:[%s3010_s20 + $0xd0] sm:$0xff] }
 0x195   : > { %1383 = vmatpush.msrb.mxu3 %v1288_v62  ;;  %1324 = vmatpush.msrb.mxu0 %v1239_v63  ;;  %v1450_v57 = vld [vmem:[%s3010_s20 + $0x1c0] sm:$0xff]  ;;  %v1433_v59 = vld [vmem:[%s3010_s20 + $0x138] sm:$0xff]  ;;  %v1400_v60 = vld [vmem:[%s3010_s20 + $0x30] sm:$0xff] }
 0x196   : > { %1364 = vmatpush.msrb.mxu2 %v1271_v1  ;;  %1230 = vmatmul.f32.vlgmr.msra.gmra.mxu3 %v3183_v7  ;;  %v1449_v61 = vld [vmem:[%s3010_s20 + $0x1b8] sm:$0xff]  ;;  %v1419_v62 = vld [vmem:[%s3010_s20 + $0xc8] sm:$0xff]  ;;  %v1432_v63 = vld [vmem:[%s3010_s20 + $0x130] sm:$0xff] }
 0x197   : > { %1384 = vmatpush.msrb.mxu3 %v1287_v2  ;;  %1325 = vmatpush.msrb.mxu0 %v1238_v3  ;;  %v1399_v0 = vld [vmem:[%s3010_s20 + $0x28] sm:$0xff]  ;;  %v1448_v1 = vld [vmem:[%s3010_s20 + $0x1b0] sm:$0xff]  ;;  %v1418_v2 = vld [vmem:[%s3010_s20 + $0xc0] sm:$0xff] }
 0x198   : > { %1365 = vmatpush.msrb.mxu2 %v1270_v5  ;;  %1342 = vmatpush.msrb.mxu1 %v1257_v9  ;;  %v1398_v3 = vld [vmem:[%s3010_s20 + $0x20] sm:$0xff]  ;;  %v1417_v4 = vld [vmem:[%s3010_s20 + $0xb8] sm:$0xff]  ;;  %v1431_v9 = vld [vmem:[%s3010_s20 + $0x128] sm:$0xff] }
 0x199   : > { %1385 = vmatpush.msrb.mxu3 %v1286_v6  ;;  %1210 = vmatmul.f32.vlgmr.msra.gmra.mxu2 %v3183_v7  ;;  %v1397_v5 = vld [vmem:[%s3010_s20 + $0x18] sm:$0xff]  ;;  %v1396_v6 = vld [vmem:[%s3010_s20 + $0x10] sm:$0xff] }
 0x19a   : > { %1326 = vmatpush.msrb.mxu0 %v1237_v8  ;;  %1366 = vmatpush.msrb.mxu2 %v1269_v10  ;;  %v1416_v8 = vld [vmem:[%s3010_s20 + $0xb0] sm:$0xff]  ;;  %v1447_v10 = vld [vmem:[%s3010_s20 + $0x1a8] sm:$0xff] }
 0x19b   : > { %1386 = vmatpush.msrb.mxu3 %v1285_v11  ;;  %1343 = vmatpush.msrb.mxu1 %v1256_v13  ;;  %v1395_v11 = vld [vmem:[%s3010_s20 + $0x8] sm:$0xff]  ;;  %v1430_v13 = vld [vmem:[%s3010_s20 + $0x120] sm:$0xff] }
 0x19c   : > { %1327 = vmatpush.msrb.mxu0 %v1236_v12  ;;  %1367 = vmatpush.msrb.mxu2 %v1268_v14  ;;  %v1415_v12 = vld [vmem:[%s3010_s20 + $0xa8] sm:$0xff]  ;;  %v1446_v14 = vld [vmem:[%s3010_s20 + $0x1a0] sm:$0xff] }
 0x19d   : > { %1387 = vmatpush.msrb.mxu3 %v1284_v15  ;;  %1344 = vmatpush.msrb.mxu1 %v1255_v17  ;;  %v1394_v15 = vld [vmem:[%s3010_s20] sm:$0xff]  ;;  %v1429_v17 = vld [vmem:[%s3010_s20 + $0x118] sm:$0xff] }
 0x19e   : > { %1328 = vmatpush.msrb.mxu0 %v1235_v16  ;;  %1368 = vmatpush.msrb.mxu2 %v1267_v18  ;;  %v1414_v16 = vld [vmem:[%s3010_s20 + $0xa0] sm:$0xff]  ;;  %v1445_v18 = vld [vmem:[%s3010_s20 + $0x198] sm:$0xff] }
 0x19f   : > { %1388 = vmatpush.msrb.mxu3 %v1283_v19  ;;  %1345 = vmatpush.msrb.mxu1 %v1254_v21  ;;  %v1413_v19 = vld [vmem:[%s3010_s20 + $0x98] sm:$0xff]  ;;  %v1444_v21 = vld [vmem:[%s3010_s20 + $0x190] sm:$0xff] }
 0x1a0   : > { %1329 = vmatpush.msrb.mxu0 %v1234_v20  ;;  %1369 = vmatpush.msrb.mxu2 %v1266_v22  ;;  %v1428_v20 = vld [vmem:[%s3010_s20 + $0x110] sm:$0xff] }
 0x1a1   : > { %1389 = vmatpush.msrb.mxu3 %v1282_v23  ;;  %1190 = vmatmul.f32.vlgmr.msra.gmra.mxu1 %v3183_v7  ;;  %v1412_v22 = vld [vmem:[%s3010_s20 + $0x90] sm:$0xff]  ;;  %v1427_v23 = vld [vmem:[%s3010_s20 + $0x108] sm:$0xff] }
 0x1a2   : > { %1330 = vmatmul.f32.vlgmr.msrb.gmra.mxu0 %v3183_v7  ;;  %1370 = vmatmul.f32.vlgmr.msrb.gmra.mxu2 %v3183_v7 }
 0x1a3   : > { %1390 = vmatmul.f32.vlgmr.msrb.gmra.mxu3 %v3183_v7  ;;  %1346 = vmatpush.msrb.mxu1 %v1253_v24  ;;  %v1443_v24 = vld [vmem:[%s3010_s20 + $0x188] sm:$0xff] }
 0x1a4   : > { %1474 = vmatpush.msra.mxu0 %v1409_v25  ;;  %1514 = vmatpush.msra.mxu2 %v1441_v26  ;;  %v1411_v25 = vld [vmem:[%s3010_s20 + $0x88] sm:$0xff]  ;;  %v1426_v26 = vld [vmem:[%s3010_s20 + $0x100] sm:$0xff] }
 0x1a5   : > { %1347 = vmatpush.msrb.mxu1 %v1252_v27  ;;  %1534 = vmatpush.msra.mxu3 %v1457_v28  ;;  %v1442_v27 = vld [vmem:[%s3010_s20 + $0x180] sm:$0xff] }
 0x1a6   : > { %1475 = vmatpush.msra.mxu0 %v1408_v29  ;;  %1515 = vmatpush.msra.mxu2 %v1440_v30  ;;  %v1410_v28 = vld [vmem:[%s3010_s20 + $0x80] sm:$0xff]  ;;  %s3702_s20 = sld [smem:[#allocation21_spill]] }
 0x1a7   : > { %1348 = vmatpush.msrb.mxu1 %v1251_v31  ;;  %1535 = vmatpush.msra.mxu3 %v1456_v32  ;;  %v2631_v30 = vld [vmem:[%s3700_s21] ss:$0 sm:$0xff] }
 0x1a8   : > { %1476 = vmatpush.msra.mxu0 %v1407_v33  ;;  %1516 = vmatpush.msra.mxu2 %v1439_v34  ;;  %v2635_v33 = vld [vmem:[%s3701_s27] ss:$0 sm:$0xff] }
 0x1a9   : > { %1349 = vmatpush.msrb.mxu1 %v1250_v35  ;;  %1536 = vmatpush.msra.mxu3 %v1455_v36 }
 0x1aa   : > { %1350 = vmatmul.f32.vlgmr.msrb.gmra.mxu1 %v3183_v7  ;;  %1477 = vmatpush.msra.mxu0 %v1406_v37  ;;  %v2633_v37 = vld [vmem:[%s3700_s21 + $0x3] ss:$0 sm:$0xff] }
 0x1ab   : > { %1494 = vmatpush.msra.mxu1 %v1425_v38  ;;  %1517 = vmatpush.msra.mxu2 %v1438_v39 }
 0x1ac   : > { %1478 = vmatpush.msra.mxu0 %v1405_v40  ;;  %1537 = vmatpush.msra.mxu3 %v1454_v41  ;;  %v2632_v40 = vld [vmem:[%s3700_s21 + $0x2] ss:$0 sm:$0xff]  ;;  %v2634_v41 = vld [vmem:[%s3700_s21 + $0x1] ss:$0 sm:$0xff] }
 0x1ad   : > { %1495 = vmatpush.msra.mxu1 %v1424_v42  ;;  %1518 = vmatpush.msra.mxu2 %v1437_v43  ;;  %v2636_v42 = vld [vmem:[%s3701_s27 + $0x2] ss:$0 sm:$0xff]  ;;  %v2637_v43 = vld [vmem:[%s3701_s27 + $0x3] ss:$0 sm:$0xff] }
 0x1ae   : > { %1479 = vmatpush.msra.mxu0 %v1404_v44  ;;  %1538 = vmatpush.msra.mxu3 %v1453_v45  ;;  %v2638_v45 = vld [vmem:[%s3701_s27 + $0x1] ss:$0 sm:$0xff] }
 0x1af   : > { %1496 = vmatpush.msra.mxu1 %v1423_v46  ;;  %1519 = vmatpush.msra.mxu2 %v1436_v47 }
 0x1b0   : > { %1480 = vmatpush.msra.mxu0 %v1403_v48  ;;  %1539 = vmatpush.msra.mxu3 %v1452_v49 }
 0x1b1   : > { %1497 = vmatpush.msra.mxu1 %v1422_v50  ;;  %1520 = vmatpush.msra.mxu2 %v1435_v51 }
 0x1b2   : > { %1481 = vmatpush.msra.mxu0 %v1402_v52  ;;  %1540 = vmatpush.msra.mxu3 %v1451_v53 }
 0x1b3   : > { %1498 = vmatpush.msra.mxu1 %v1421_v54  ;;  %1521 = vmatpush.msra.mxu2 %v1434_v55 }
 0x1b4   : > { %1482 = vmatpush.msra.mxu0 %v1401_v56  ;;  %1541 = vmatpush.msra.mxu3 %v1450_v57  ;;  %v2639_v57 = vld [vmem:[%s3702_s20] ss:$0 sm:$0xff] }
 0x1b5   : > { %1499 = vmatpush.msra.mxu1 %v1420_v58  ;;  %1522 = vmatpush.msra.mxu2 %v1433_v59 }
 0x1b6   : > { %1483 = vmatpush.msra.mxu0 %v1400_v60  ;;  %1542 = vmatpush.msra.mxu3 %v1449_v61  ;;  %v2640_v60 = vld [vmem:[%s3702_s20 + $0x1] ss:$0 sm:$0xff] }
 0x1b7   : > { %1500 = vmatpush.msra.mxu1 %v1419_v62  ;;  %1523 = vmatpush.msra.mxu2 %v1432_v63  ;;  %v2642_v63 = vld [vmem:[%s3702_s20 + $0x2] ss:$0 sm:$0xff] }
 0x1b8   : > { %1484 = vmatpush.msra.mxu0 %v1399_v0  ;;  %1543 = vmatpush.msra.mxu3 %v1448_v1  ;;  %v2643_v0 = vld [vmem:[%s3702_s20 + $0x3] ss:$0 sm:$0xff] }
 0x1b9   : > { %1501 = vmatpush.msra.mxu1 %v1418_v2  ;;  %1524 = vmatpush.msra.mxu2 %v1431_v9 }
 0x1ba   : > { %1485 = vmatpush.msra.mxu0 %v1398_v3  ;;  %1544 = vmatpush.msra.mxu3 %v1447_v10 }
 0x1bb   : > { %1502 = vmatpush.msra.mxu1 %v1417_v4  ;;  %1525 = vmatpush.msra.mxu2 %v1430_v13 }
 0x1bc   : > { %1486 = vmatpush.msra.mxu0 %v1397_v5  ;;  %1545 = vmatpush.msra.mxu3 %v1446_v14  ;;  %v2641_v5 = vld [vmem:[%s3705_s30] ss:$0 sm:$0xff] }
 0x1bd   : > { %1503 = vmatpush.msra.mxu1 %v1416_v8  ;;  %1526 = vmatpush.msra.mxu2 %v1429_v17 }
 0x1be   : > { %1487 = vmatpush.msra.mxu0 %v1396_v6  ;;  %1546 = vmatpush.msra.mxu3 %v1445_v18 }
 0x1bf   : > { %1504 = vmatpush.msra.mxu1 %v1415_v12  ;;  %1527 = vmatpush.msra.mxu2 %v1428_v20 }
 0x1c0   : > { %1488 = vmatpush.msra.mxu0 %v1395_v11  ;;  %1547 = vmatpush.msra.mxu3 %v1444_v21 }
 0x1c1   : > { %1505 = vmatpush.msra.mxu1 %v1414_v16  ;;  %1528 = vmatpush.msra.mxu2 %v1427_v23 }
 0x1c2   : > { %1489 = vmatpush.msra.mxu0 %v1394_v15  ;;  %1548 = vmatpush.msra.mxu3 %v1443_v24 }
 0x1c3   : > { %1490 = vmatmul.f32.vlgmr.msra.gmra.mxu0 %v3183_v7  ;;  %1506 = vmatpush.msra.mxu1 %v1413_v19 }
 0x1c4   : > { %1529 = vmatpush.msra.mxu2 %v1426_v26  ;;  %1549 = vmatpush.msra.mxu3 %v1442_v27 }
 0x1c5   : > { %1507 = vmatpush.msra.mxu1 %v1412_v22  ;;  %1530 = vmatmul.f32.vlgmr.msra.gmra.mxu2 %v3183_v7 }
 0x1c6   : > { %1550 = vmatmul.f32.vlgmr.msra.gmra.mxu3 %v3183_v7 }
 0x1c7   : > { %1508 = vmatpush.msra.mxu1 %v1411_v25 }
 0x1c9   : > { %1509 = vmatpush.msra.mxu1 %v1410_v28 }
 0x1ca   : > { %1510 = vmatmul.f32.vlgmr.msra.gmra.mxu1 %v3183_v7 }
 0x211   : > { %v1171_v29 = vpop.f32.mrf.mxu0 }
 0x212   : > { %v1172_v34 = vadd.f32 %v2631_v30, %v1171_v29 }
 0x214   : > { %v1554_v39 = vmul.f32 0.17677669, %v1172_v34 }
 0x219   : > { %v1231_v32 = vpop.f32.mrf.mxu3 }
 0x21a   : > { %v1232_v44 = vadd.f32 %v2633_v37, %v1231_v32 }
 0x21c   : > { %v1211_v31 = vpop.f32.mrf.mxu2  ;;  %v1557_v53 = vmul.f32 0.17677669, %v1232_v44 }
 0x21d   : > { %v1212_v46 = vadd.f32 %v2632_v40, %v1211_v31  ;;  %v1806_v40 = vld [vmem:[%s3021_s18 + $0x10] sm:$0xff] }
 0x21e   : > { %v1191_v35 = vpop.f32.mrf.mxu1 }
 0x21f   : > { %v1331_v36 = vpop.f32.mrf.mxu0  ;;  %v1192_v47 = vadd.f32 %v2634_v41, %v1191_v35  ;;  %v1556_v55 = vmul.f32 0.17677669, %v1212_v46 }
 0x220   : > { %v1332_v38 = vadd.f32 %v2635_v33, %v1331_v36 }
 0x221   : > { %v1555_v56 = vmul.f32 0.17677669, %v1192_v47 }
 0x222   : > { %2527 = vmatpush.xpose.msk.msrb.mxu0 %vm1562_vm4, %v1332_v38 }
 0x225   : > { %v1371_v48 = vpop.f32.mrf.mxu2  ;;  %2528 = vmatmul.msk.f32.vlgmr.msrb.gmra.mxu0 %vm1562_vm4, %v1554_v39  ;;  %v1807_v39 = vld [vmem:[%s3021_s18 + $0x18] sm:$0xff] }
 0x226   : > { %v1372_v49 = vadd.f32 %v2636_v42, %v1371_v48  ;;  %v1391_v50 = vpop.f32.mrf.mxu3  ;;  %v1805_v42 = vld [vmem:[%s3021_s18 + $0x8] sm:$0xff] }
 0x227   : > { %v1392_v51 = vadd.f32 %v2637_v43, %v1391_v50  ;;  %v1351_v52 = vpop.f32.mrf.mxu1 }
 0x228   : > { %v1352_v54 = vadd.f32 %v2638_v45, %v1351_v52  ;;  %2531 = vmatpush.xpose.msk.msrb.mxu2 %vm1562_vm4, %v1372_v49 }
 0x229   : > { %2533 = vmatpush.xpose.msk.msrb.mxu3 %vm1562_vm4, %v1392_v51 }
 0x22a   : > { %2529 = vmatpush.xpose.msk.msrb.mxu1 %vm1562_vm4, %v1352_v54  ;;  %v1804_v54 = vld [vmem:[%s3021_s18] sm:$0xff] }
 0x22b   : > { %2532 = vmatmul.msk.f32.vlgmr.msrb.gmra.mxu2 %vm1562_vm4, %v1556_v55  ;;  %v1811_v55 = vld [vmem:[%s3021_s18 + $0x38] sm:$0xff] }
 0x22c   : > { %2534 = vmatmul.msk.f32.vlgmr.msrb.gmra.mxu3 %vm1562_vm4, %v1557_v53 }
 0x22d   : > { %2530 = vmatmul.msk.f32.vlgmr.msrb.gmra.mxu1 %vm1562_vm4, %v1555_v56  ;;  %v1810_v56 = vld [vmem:[%s3021_s18 + $0x30] sm:$0xff] }
 0x240   : > { %v1491_v58 = vpop.f32.mrf.mxu0 }
 0x241   : > { %v1492_v59 = vadd.f32 %v2639_v57, %v1491_v58  ;;  %v1809_v57 = vld [vmem:[%s3021_s18 + $0x28] sm:$0xff]  ;;  %v1808_v58 = vld [vmem:[%s3021_s18 + $0x20] sm:$0xff] }
 0x243   : > { %1730 = vmatpush.msra.mxu0 %v1492_v59  ;;  %v1815_v59 = vld [vmem:[%s3021_s18 + $0x58] sm:$0xff] }
 0x245   : > { %1835 = vmatpush.msrb.mxu0 %v1807_v39  ;;  %v1979_v39 = vld [vmem:[%s3040_s29 + $0xa8] sm:$0xff] }
 0x247   : > { %v1511_v61 = vpop.f32.mrf.mxu1  ;;  %1836 = vmatpush.msrb.mxu0 %v1806_v40  ;;  %v1976_v40 = vld [vmem:[%s3040_s29 + $0x90] sm:$0xff] }
 0x248   : > { %v1512_v62 = vadd.f32 %v2640_v60, %v1511_v61  ;;  %v1531_v1 = vpop.f32.mrf.mxu2  ;;  %v1814_v60 = vld [vmem:[%s3021_s18 + $0x50] sm:$0xff]  ;;  %v1813_v61 = vld [vmem:[%s3021_s18 + $0x48] sm:$0xff] }
 0x249   : > { %v1551_v2 = vpop.f32.mrf.mxu3  ;;  %v1532_v3 = vadd.f32 %v2642_v63, %v1531_v1  ;;  %1837 = vmatpush.msrb.mxu0 %v1805_v42  ;;  %v1819_v63 = vld [vmem:[%s3021_s18 + $0x78] sm:$0xff]  ;;  %v1817_v1 = vld [vmem:[%s3021_s18 + $0x68] sm:$0xff]  ;;  %v1974_v42 = vld [vmem:[%s3040_s29 + $0x80] sm:$0xff] }
 0x24a   : > { %1753 = vmatpush.msra.mxu1 %v1512_v62  ;;  %v1552_v4 = vadd.f32 %v2643_v0, %v1551_v2  ;;  %v1812_v62 = vld [vmem:[%s3021_s18 + $0x40] sm:$0xff]  ;;  %v1818_v0 = vld [vmem:[%s3021_s18 + $0x70] sm:$0xff] }
 0x24b   : > { %1776 = vmatpush.msra.mxu2 %v1532_v3  ;;  %1838 = vmatpush.msrb.mxu0 %v1804_v54  ;;  %v1816_v2 = vld [vmem:[%s3021_s18 + $0x60] sm:$0xff]  ;;  %s3714_s18 = sld [smem:[#allocation38_spill]] (!%p2543_p1) }
 0x24c   : > { %1799 = vmatpush.msra.mxu3 %v1552_v4  ;;  %1858 = vmatpush.msrb.mxu1 %v1811_v55  ;;  %v1962_v54 = vld [vmem:[%s3040_s29 + $0x20] sm:$0xff]  ;;  %v1963_v55 = vld [vmem:[%s3040_s29 + $0x28] sm:$0xff] }
 0x24d   : > { %1881 = vmatpush.msrb.mxu2 %v1815_v59  ;;  %v1959_v59 = vld [vmem:[%s3040_s29 + $0x8] sm:$0xff] }
 0x24e   : > { %1859 = vmatpush.msrb.mxu1 %v1810_v56  ;;  %1904 = vmatpush.msrb.mxu3 %v1819_v63  ;;  %v1960_v56 = vld [vmem:[%s3040_s29 + $0x10] sm:$0xff] }
 0x24f   : > { %1882 = vmatpush.msrb.mxu2 %v1814_v60  ;;  %v2069_v60 = vld [vmem:[%s3050_s24 + $0x78] sm:$0xff]  ;;  %v2084_v63 = vld [vmem:[%s3050_s24 + $0xf0] sm:$0xff] }
 0x250   : > { %1860 = vmatpush.msrb.mxu1 %v1809_v57  ;;  %1905 = vmatpush.msrb.mxu3 %v1818_v0  ;;  %v1961_v57 = vld [vmem:[%s3040_s29 + $0x18] sm:$0xff]  ;;  %v2067_v0 = vld [vmem:[%s3050_s24 + $0x68] sm:$0xff] }
 0x251   : > { %1883 = vmatpush.msrb.mxu2 %v1813_v61  ;;  %v2085_v61 = vld [vmem:[%s3050_s24 + $0xf8] sm:$0xff] }
 0x252   : > { %1861 = vmatpush.msrb.mxu1 %v1808_v58  ;;  %1906 = vmatpush.msrb.mxu3 %v1817_v1  ;;  %v1958_v58 = vld [vmem:[%s3040_s29] sm:$0xff]  ;;  %v2083_v1 = vld [vmem:[%s3050_s24 + $0xe8] sm:$0xff] }
 0x253   : > { %1884 = vmatpush.msrb.mxu2 %v1812_v62  ;;  %v2068_v62 = vld [vmem:[%s3050_s24 + $0x70] sm:$0xff] }
 0x254   : > { %1907 = vmatpush.msrb.mxu3 %v1816_v2 }
 0x2a2   : > { %v1586_v6 = vpop.f32.mrf.mxu0 }
 0x2a3   : > { %v1587_v8 = vadd.f32 %v2641_v5, %v1586_v6 }
 0x2a5   : > { %v1668_v9 = vsel %vm1667_vm5, %v1587_v8, -inf }
 0x2a6   : > { %1669 = vmax.xlane.f32.xlu1 %v1668_v9 }
 0x2aa   : > { %v1612_v10 = vpop.f32.mrf.mxu1 }
 0x2ab   : > { %v1613_v11 = vadd.f32 %v2641_v5, %v1612_v10 }
 0x2ad   : > { %v1671_v12 = vsel %vm1667_vm5, %v1613_v11, -inf }
 0x2ae   : > { %v1638_v13 = vpop.f32.mrf.mxu2  ;;  %1672 = vmax.xlane.f32.xlu1 %v1671_v12 }
 0x2af   : > { %v1639_v14 = vadd.f32 %v2641_v5, %v1638_v13  ;;  %v1664_v16 = vpop.f32.mrf.mxu3  ;;  %v2644_v13 = vld [vmem:[%s3706_s25] ss:$0 sm:$0xff] }
 0x2b0   : > { %v1665_v17 = vadd.f32 %v2641_v5, %v1664_v16 }
 0x2b1   : > { %v1674_v15 = vsel %vm1667_vm5, %v1639_v14, -inf }
 0x2b2   : > { %1675 = vmax.xlane.f32.xlu0 %v1674_v15  ;;  %v1677_v18 = vsel %vm1667_vm5, %v1665_v17, -inf }
 0x2ba   : > { %1678 = vmax.xlane.f32.xlu0 %v1677_v18  ;;  %v2773_v18 = vmov 128.0  }
 0x319   : > { %v1670_v19 = vpop.xlane.xlu1 %1669 }
 0x31a   : > { %v1680_v20 = vsub.f32 %v1587_v8, %v1670_v19  ;;  %v1988_v19 = vld [vmem:[%s3040_s29 + $0xf0] sm:$0xff] }
 0x31c   : > { %v1684_v21 = vmul.f32 1.442695, %v1680_v20  ;;  %v1989_v20 = vld [vmem:[%s3040_s29 + $0xf8] sm:$0xff] }
 0x31e   : > { %2650 = vpow2.f32 %v1684_v21  ;;  %v1986_v21 = vld [vmem:[%s3040_s29 + $0xe0] sm:$0xff] }
 0x321   : > { %v1673_v22 = vpop.xlane.xlu1 %1672 }
 0x322   : > { %v1681_v23 = vsub.f32 %v1613_v11, %v1673_v22  ;;  %v1987_v22 = vld [vmem:[%s3040_s29 + $0xe8] sm:$0xff] }
 0x324   : > { %v2651_v24 = vpop.eup %2650  ;;  %v1686_v25 = vmul.f32 1.442695, %v1681_v23 }
 0x325   : > { %v1676_v26 = vpop.xlane.xlu0 %1675  ;;  %v1692_v27 = vsel %vm1667_vm5, %v2651_v24, 0.0 }
 0x326   : > { %2652 = vpow2.f32 %v1686_v25  ;;  %v1682_v28 = vsub.f32 %v1639_v14, %v1676_v26  ;;  %1693 = vadd.xlane.f32.xlu0 %v1692_v27 }
 0x328   : > { %v1688_v29 = vmul.f32 1.442695, %v1682_v28 }
 0x32a   : > { %2654 = vpow2.f32 %v1688_v29 }
 0x32c   : > { %v2653_v30 = vpop.eup %2652 }
 0x32d   : > { %v1679_v31 = vpop.xlane.xlu0 %1678  ;;  %v1695_v32 = vsel %vm1667_vm5, %v2653_v30, 0.0 }
 0x32e   : > { %v1683_v33 = vsub.f32 %v1665_v17, %v1679_v31  ;;  %1696 = vadd.xlane.f32.xlu1 %v1695_v32  ;;  %v1984_v32 = vld [vmem:[%s3040_s29 + $0xd0] sm:$0xff] }
 0x330   : > { %v2655_v34 = vpop.eup %2654  ;;  %v1690_v35 = vmul.f32 1.442695, %v1683_v33  ;;  %v1985_v33 = vld [vmem:[%s3040_s29 + $0xd8] sm:$0xff] }
 0x331   : > { %v1698_v36 = vsel %vm1667_vm5, %v2655_v34, 0.0 }
 0x332   : > { %2656 = vpow2.f32 %v1690_v35  ;;  %1699 = vadd.xlane.f32.xlu2 %v1698_v36  ;;  %v1983_v35 = vld [vmem:[%s3040_s29 + $0xc8] sm:$0xff]  ;;  %v1980_v36 = vld [vmem:[%s3040_s29 + $0xb0] sm:$0xff] }
 0x338   : > { %v2657_v37 = vpop.eup %2656 }
 0x339   : > { %v1701_v38 = vsel %vm1667_vm5, %v2657_v37, 0.0 }
 0x33a   : > { %1702 = vadd.xlane.f32.xlu2 %v1701_v38  ;;  %v1978_v38 = vld [vmem:[%s3040_s29 + $0xa0] sm:$0xff] }
 0x399   : > { %v1694_v41 = vpop.xlane.xlu0 %1693 }
 0x39a   : > { %2658 = vrcp.f32 %v1694_v41  ;;  %v1977_v41 = vld [vmem:[%s3040_s29 + $0x98] sm:$0xff] }
 0x3a0   : > { %v2659_v43 = vpop.eup %2658 }
 0x3a1   : > { %v1708_v44 = vmul.f32 %v2659_v43, %v2651_v24  ;;  %v1697_v45 = vpop.xlane.xlu1 %1696  ;;  %v1975_v43 = vld [vmem:[%s3040_s29 + $0x88] sm:$0xff] }
 0x3a2   : > { %2660 = vrcp.f32 %v1697_v45  ;;  %v1973_v45 = vld [vmem:[%s3040_s29 + $0x78] sm:$0xff] }
 0x3a3   : > { %2535 = vmatmul.msk.f32.vlgmr.msra.gmra.mxu0 %vm1667_vm5, %v1708_v44  ;;  %v1972_v44 = vld [vmem:[%s3040_s29 + $0x70] sm:$0xff] }
 0x3a4   : > { %1996 = vmatpush.msra.mxu0 %v1988_v19  ;;  %v2082_v19 = vld [vmem:[%s3050_s24 + $0xe0] sm:$0xff] }
 0x3a5   : > { %v1700_v46 = vpop.xlane.xlu2 %1699 }
 0x3a6   : > { %2662 = vrcp.f32 %v1700_v46  ;;  %1997 = vmatpush.msra.mxu0 %v1986_v21  ;;  %v1970_v46 = vld [vmem:[%s3040_s29 + $0x60] sm:$0xff]  ;;  %v2081_v21 = vld [vmem:[%s3050_s24 + $0xd8] sm:$0xff] }
 0x3a8   : > { %v2661_v47 = vpop.eup %2660  ;;  %1998 = vmatpush.msra.mxu0 %v1984_v32  ;;  %v2059_v32 = vld [vmem:[%s3050_s24 + $0x28] sm:$0xff] }
 0x3a9   : > { %v1709_v48 = vmul.f32 %v2661_v47, %v2653_v30  ;;  %v1971_v47 = vld [vmem:[%s3040_s29 + $0x68] sm:$0xff] }
 0x3ab   : > { %2536 = vmatmul.msk.f32.vlgmr.msra.gmra.mxu1 %vm1667_vm5, %v1709_v48  ;;  %v1968_v48 = vld [vmem:[%s3040_s29 + $0x50] sm:$0xff] }
 0x3ac   : > { %v2663_v49 = vpop.eup %2662  ;;  %2016 = vmatpush.msra.mxu1 %v1989_v20  ;;  %v2065_v20 = vld [vmem:[%s3050_s24 + $0x58] sm:$0xff] }
 0x3ad   : > { %v1710_v50 = vmul.f32 %v2663_v49, %v2655_v34  ;;  %v1703_v51 = vpop.xlane.xlu2 %1702  ;;  %v1982_v34 = vld [vmem:[%s3040_s29 + $0xc0] sm:$0xff]  ;;  %v1969_v49 = vld [vmem:[%s3040_s29 + $0x58] sm:$0xff] }
 0x3ae   : > { %2664 = vrcp.f32 %v1703_v51  ;;  %2017 = vmatpush.msra.mxu1 %v1987_v22  ;;  %1999 = vmatpush.msra.mxu0 %v1982_v34  ;;  %v1967_v51 = vld [vmem:[%s3040_s29 + $0x48] sm:$0xff]  ;;  %v2064_v22 = vld [vmem:[%s3050_s24 + $0x50] sm:$0xff]  ;;  %v2058_v34 = vld [vmem:[%s3050_s24 + $0x20] sm:$0xff] }
 0x3af   : > { %2537 = vmatmul.msk.f32.vlgmr.msra.gmra.mxu2 %vm1667_vm5, %v1710_v50  ;;  %2666 = vrcp.f32 %v2773_v18  ;;  %v1966_v50 = vld [vmem:[%s3040_s29 + $0x40] sm:$0xff] }
 0x3b0   : > { %2018 = vmatpush.msra.mxu1 %v1985_v33  ;;  %2000 = vmatpush.msra.mxu0 %v1980_v36  ;;  %v2066_v18 = vld [vmem:[%s3050_s24 + $0x60] sm:$0xff]  ;;  %v2075_v33 = vld [vmem:[%s3050_s24 + $0xa8] sm:$0xff]  ;;  %v2057_v36 = vld [vmem:[%s3050_s24 + $0x18] sm:$0xff] }
 0x3b1   : > { %2090 = vmatpush.msra.mxu2 %v2069_v60 }
 0x3b2   : > { %2019 = vmatpush.msra.mxu1 %v1983_v35  ;;  %2001 = vmatpush.msra.mxu0 %v1978_v38  ;;  %v2074_v35 = vld [vmem:[%s3050_s24 + $0xa0] sm:$0xff]  ;;  %v2056_v38 = vld [vmem:[%s3050_s24 + $0x10] sm:$0xff] }
 0x3b3   : > { %2091 = vmatpush.msra.mxu2 %v2068_v62 }
 0x3b4   : > { %v2665_v52 = vpop.eup %2664  ;;  %2002 = vmatpush.msra.mxu0 %v1976_v40  ;;  %v2055_v40 = vld [vmem:[%s3050_s24 + $0x8] sm:$0xff] }
 0x3b5   : > { %v1711_v53 = vmul.f32 %v2665_v52, %v2657_v37  ;;  %v2667_v23 = vpop.eup %2666  ;;  %v1981_v37 = vld [vmem:[%s3040_s29 + $0xb8] sm:$0xff]  ;;  %v1964_v52 = vld [vmem:[%s3040_s29 + $0x30] sm:$0xff]  ;;  %2092 = vmatpush.msra.mxu2 %v2067_v0 }
 0x3b6   : > { %v1926_v24 = vmul.f32 128.0, %v2667_v23  ;;  %vm1930_vm6 = vweird.f32 %v2667_v23  ;;  %2020 = vmatpush.msra.mxu1 %v1981_v37  ;;  %2003 = vmatpush.msra.mxu0 %v1974_v42  ;;  %v2073_v37 = vld [vmem:[%s3050_s24 + $0x98] sm:$0xff]  ;;  %v2054_v42 = vld [vmem:[%s3050_s24] sm:$0xff] }
 0x3b7   : > { %2538 = vmatmul.msk.f32.vlgmr.msra.gmra.mxu3 %vm1667_vm5, %v1711_v53  ;;  %v1965_v53 = vld [vmem:[%s3040_s29 + $0x38] sm:$0xff]  ;;  %2093 = vmatpush.msra.mxu2 %v2066_v18 }
 0x3b8   : > { %v1927_v25 = vsub.f32 1.0, %v1926_v24  ;;  %2021 = vmatpush.msra.mxu1 %v1979_v39  ;;  %2004 = vmatpush.msra.mxu0 %v1972_v44  ;;  %v2063_v24 = vld [vmem:[%s3050_s24 + $0x48] sm:$0xff]  ;;  %v2072_v39 = vld [vmem:[%s3050_s24 + $0x90] sm:$0xff]  ;;  %v1990_v44 = vld [vmem:[%s3045_s5] sm:$0x3] }
 0x3b9   : > { %2110 = vmatpush.msra.mxu3 %v2085_v61  ;;  %2094 = vmatpush.msra.mxu2 %v2065_v20 }
 0x3ba   : > { %v1928_v26 = vmul.f32 %v2667_v23, %v1927_v25  ;;  %2022 = vmatpush.msra.mxu1 %v1977_v41  ;;  %2005 = vmatpush.msra.mxu0 %v1970_v46  ;;  %v2079_v25 = vld [vmem:[%s3050_s24 + $0xc8] sm:$0xff]  ;;  %v1993_v46 = vperm.slane %v1990_v44, 1 }
 0x3bb   : > { %2111 = vmatpush.msra.mxu3 %v2084_v63  ;;  %2095 = vmatpush.msra.mxu2 %v2064_v22  ;;  %v2071_v41 = vld [vmem:[%s3050_s24 + $0x88] sm:$0xff] }
 0x3bc   : > { %2023 = vmatpush.msra.mxu1 %v1975_v43  ;;  %2006 = vmatpush.msra.mxu0 %v1968_v48  ;;  %v2070_v43 = vld [vmem:[%s3050_s24 + $0x80] sm:$0xff] }
 0x3bd   : > { %2112 = vmatpush.msra.mxu3 %v2083_v1  ;;  %2096 = vmatpush.msra.mxu2 %v2063_v24 }
 0x3be   : > { %2024 = vmatpush.msra.mxu1 %v1973_v45  ;;  %2007 = vmatpush.msra.mxu0 %v1966_v50  ;;  %v1992_v45 = vperm.slane %v1990_v44, 0 }
 0x3bf   : > { %2113 = vmatpush.msra.mxu3 %v2082_v19 }
 0x3c0   : > { %2025 = vmatpush.msra.mxu1 %v1971_v47  ;;  %2008 = vmatpush.msra.mxu0 %v1964_v52 }
 0x3c1   : > { %2114 = vmatpush.msra.mxu3 %v2081_v21 }
 0x3c2   : > { %2026 = vmatpush.msra.mxu1 %v1969_v49  ;;  %2009 = vmatpush.msra.mxu0 %v1962_v54 }
 0x3c4   : > { %2027 = vmatpush.msra.mxu1 %v1967_v51  ;;  %2010 = vmatpush.msra.mxu0 %v1960_v56 }
 0x3c6   : > { %2028 = vmatpush.msra.mxu1 %v1965_v53  ;;  %2011 = vmatpush.msra.mxu0 %v1958_v58 }
 0x3c8   : > { %2029 = vmatpush.msra.mxu1 %v1963_v55 }
 0x3ca   : > { %2030 = vmatpush.msra.mxu1 %v1961_v57 }
 0x3cc   : > { %2031 = vmatpush.msra.mxu1 %v1959_v59 }
 0x420   : > { %v1732_v3 = vpop.f32.mrf.mxu0 }
 0x421   : > { %2539 = vmatmul.msk.f32.vlgmr.msrb.gmra.mxu0 %vm1562_vm4, %v1732_v3 }
 0x428   : > { %v1755_v4 = vpop.f32.mrf.mxu1 }
 0x429   : > { %2540 = vmatmul.msk.f32.vlgmr.msrb.gmra.mxu1 %vm1562_vm4, %v1755_v4 }
 0x432   : > { %v1778_v5 = vpop.f32.mrf.mxu2 }
 0x433   : > { %2541 = vmatmul.msk.f32.vlgmr.msrb.gmra.mxu2 %vm1562_vm4, %v1778_v5 }
 0x43a   : > { %v1801_v6 = vpop.f32.mrf.mxu3 }
 0x43b   : > { %2542 = vmatmul.msk.f32.vlgmr.msrb.gmra.mxu3 %vm1562_vm4, %v1801_v6 }
 0x49e   : > { %v1840_v9 = vpop.f32.mrf.mxu0 }
 0x4a6   : > { %v1863_v8 = vpop.f32.mrf.mxu1 }
 0x4a7   : > { %v1912_v11 = vadd.f32 %v1863_v8, %v1840_v9 }
 0x4b6   : > { %v1886_v10 = vpop.f32.mrf.mxu2 }
 0x4b7   : > { %v1913_v12 = vadd.f32 %v1912_v11, %v1886_v10 }
 0x4be   : > { %v1909_v14 = vpop.f32.mrf.mxu3 }
 0x4bf   : > { %v1914_v15 = vadd.f32 %v1913_v12, %v1909_v14  ;;  %v2645_v12 = vld [vmem:[%s3708_s13] ss:$0 sm:$0xff]  ;;  %s3715_s13 = sld [smem:[#allocation40_spill]] (!%p2543_p1) }
 0x4c1   : > { %v1919_v16 = vadd.f32 %v2644_v13, %v1914_v15  ;;  %v2646_v15 = vld [vmem:[%s3710_s8] ss:$0 sm:$0xff] }
 0x4c3   : > { %v1920_v17 = vadd.f32 %v1919_v16, %v3183_v7  ;;  %v1929_v7 = vadd.f32 %v2667_v23, %v1928_v26  ;;  %v2062_v26 = vld [vmem:[%s3050_s24 + $0x40] sm:$0xff] }
 0x4c4   : > { %2097 = vmatpush.msra.mxu2 %v2062_v26 }
 0x4c5   : > { %1923 = vadd.xlane.f32.xlu2 %v1920_v17  ;;  %v3348_v27 = vsel %vm1930_vm6, %v2667_v23, %v1929_v7  ;;  %v2080_v23 = vld [vmem:[%s3050_s24 + $0xd0] sm:$0xff]  ;;  %v2078_v7 = vld [vmem:[%s3050_s24 + $0xc0] sm:$0xff] }
 0x4c6   : > { %2115 = vmatpush.msra.mxu3 %v2080_v23 }
 0x4c8   : > { %2116 = vmatpush.msra.mxu3 %v2079_v25  ;;  %v2648_v25 = vld [vmem:[%s1026_s9] ss:$0 sm:$0xff] }
 0x4ca   : > { %2117 = vmatpush.msra.mxu3 %v2078_v7 }
 0x538   : > { %v1924_v28 = vpop.xlane.xlu2 %1923 }
 0x539   : > { %v1932_v29 = vmul.f32 %v3348_v27, %v1924_v28  ;;  %v2061_v28 = vld [vmem:[%s3050_s24 + $0x38] sm:$0xff] }
 0x53a   : > { %2098 = vmatpush.msra.mxu2 %v2061_v28 }
 0x53b   : > { %v3351_v30 = vsub.f32 %v1920_v17, %v1932_v29  ;;  %v2077_v29 = vld [vmem:[%s3050_s24 + $0xb8] sm:$0xff] }
 0x53c   : > { %2118 = vmatpush.msra.mxu3 %v2077_v29 }
 0x53d   : > { %v1934_v31 = vmul.f32 %v3351_v30, %v3351_v30 }
 0x53f   : > { %1935 = vadd.xlane.f32.xlu0 %v1934_v31  ;;  %v2076_v31 = vld [vmem:[%s3050_s24 + $0xb0] sm:$0xff] }
 0x540   : > { %2119 = vmatpush.msra.mxu3 %v2076_v31 }
 0x542   : > { %2120 = vmatpush.msra.mxu3 %v2075_v33 }
 0x544   : > { %2121 = vmatpush.msra.mxu3 %v2074_v35 }
 0x546   : > { %2122 = vmatpush.msra.mxu3 %v2073_v37 }
 0x548   : > { %2123 = vmatpush.msra.mxu3 %v2072_v39 }
 0x54a   : > { %2124 = vmatpush.msra.mxu3 %v2071_v41 }
 0x54c   : > { %2125 = vmatpush.msra.mxu3 %v2070_v43 }
 0x5b2   : > { %v1936_v2 = vpop.xlane.xlu0 %1935 }
 0x5b3   : > { %v1937_v3 = vmul.f32 %v1936_v2, %v3348_v27 }
 0x5b5   : > { %v1938_v4 = vadd.f32 1e-12, %v1937_v3 }
 0x5b7   : > { %2668 = vrsqrt.f32 %v1938_v4  ;;  %vm1945_vm8 = vweird.f32 %v1938_v4 }
 0x5bd   : > { %v2669_v5 = vpop.eup %2668 }
 0x5be   : > { %v1940_v6 = vmul.f32 %v2669_v5, %v1938_v4  ;;  %vm1946_vm7 = vweird.f32 %v2669_v5 }
 0x5bf   : > { %vm1947_vm9 = vmor %vm1945_vm8, %vm1946_vm7 }
 0x5c0   : > { %v1941_v8 = vmul.f32 %v2669_v5, %v1940_v6 }
 0x5c2   : > { %v1942_v9 = vmul.f32 0.5, %v1941_v8 }
 0x5c4   : > { %v1943_v10 = vsub.f32 1.5, %v1942_v9 }
 0x5c6   : > { %v1944_v11 = vmul.f32 %v2669_v5, %v1943_v10 }
 0x5c8   : > { %v1948_v13 = vsel %vm1947_vm9, %v2669_v5, %v1944_v11  ;;  %v2647_v5 = vld [vmem:[%s1023_s6] ss:$0 sm:$0xff] }
 0x5c9   : > { %v1949_v14 = vmul.f32 %v1948_v13, %v3351_v30  ;;  %v2060_v30 = vld [vmem:[%s3050_s24 + $0x30] sm:$0xff] }
 0x5ca   : > { %2099 = vmatpush.msra.mxu2 %v2060_v30 }
 0x5cb   : > { %v1953_v16 = vmul.f32 %v2645_v12, %v1949_v14 }
 0x5cc   : > { %2100 = vmatpush.msra.mxu2 %v2059_v32 }
 0x5cd   : > { %v3401_v17 = vadd.f32 %v2646_v15, %v1953_v16 }
 0x5ce   : > { %2101 = vmatpush.msra.mxu2 %v2058_v34 }
 0x5cf   : > { %2012 = vmatmul.f32.vlgmr.msra.gmra.mxu0 %v3401_v17  ;;  %2032 = vmatmul.f32.vlgmr.msra.gmra.mxu1 %v3401_v17 }
 0x5d0   : > { %2102 = vmatpush.msra.mxu2 %v2057_v36 }
 0x5d2   : > { %2103 = vmatpush.msra.mxu2 %v2056_v38 }
 0x5d4   : > { %2104 = vmatpush.msra.mxu2 %v2055_v40 }
 0x5d6   : > { %2105 = vmatpush.msra.mxu2 %v2054_v42 }
 0x64c   : > { %v2013_v47 = vpop.f32.mrf.mxu0  ;;  %v2033_v48 = vpop.f32.mrf.mxu1 }
 0x64d   : > { %v2014_v49 = vadd.f32 %v2013_v47, %v1992_v45  ;;  %v2034_v50 = vadd.f32 %v2033_v48, %v1993_v46 }
 0x64f   : > { %v2036_v51 = vmul.f32 %v2014_v49, %v2014_v49  ;;  %v2037_v52 = vmul.f32 %v2034_v50, %v2034_v50 }
 0x651   : > { %v2038_v53 = vmul.f32 %v2036_v51, %v2014_v49  ;;  %v2039_v54 = vmul.f32 %v2037_v52, %v2034_v50 }
 0x653   : > { %v2040_v55 = vmul.f32 0.044715, %v2038_v53  ;;  %v2041_v56 = vmul.f32 0.044715, %v2039_v54 }
 0x655   : > { %v2042_v57 = vadd.f32 %v2040_v55, %v2014_v49  ;;  %v2043_v58 = vadd.f32 %v2041_v56, %v2034_v50 }
 0x657   : > { %v2044_v59 = vmul.f32 0.7978846, %v2042_v57  ;;  %v2045_v60 = vmul.f32 0.7978846, %v2043_v58 }
 0x659   : > { %2670 = vtanh.f32 %v2044_v59 }
 0x65a   : > { %2672 = vtanh.f32 %v2045_v60 }
 0x65f   : > { %v2671_v61 = vpop.eup %2670 }
 0x660   : > { %v2673_v62 = vpop.eup %2672  ;;  %v2048_v63 = vadd.f32 1.0, %v2671_v61 }
 0x661   : > { %v2049_v0 = vadd.f32 1.0, %v2673_v62 }
 0x662   : > { %v2050_v1 = vmul.f32 0.5, %v2048_v63 }
 0x663   : > { %v2051_v2 = vmul.f32 0.5, %v2049_v0 }
 0x664   : > { %v2052_v3 = vmul.f32 %v2050_v1, %v2014_v49 }
 0x665   : > { %v2053_v4 = vmul.f32 %v2051_v2, %v2034_v50 }
 0x666   : > { %2106 = vmatmul.f32.vlgmr.msra.gmra.mxu2 %v2052_v3 }
 0x667   : > { %2126 = vmatmul.f32.vlgmr.msra.gmra.mxu3 %v2053_v4 }
 0x6e9   : > { %v2107_v6 = vpop.f32.mrf.mxu2 }
 0x6ea   : > { %v2108_v8 = vadd.f32 %v2647_v5, %v2107_v6  ;;  %v2127_v9 = vpop.f32.mrf.mxu3 }
 0x6ec   : > { %v2128_v10 = vadd.f32 %v2127_v9, %v2108_v8 }
 0x6ee   : > { %v2130_v11 = vadd.f32 %v2128_v10, %v3401_v17 }
 0x6f0   : > { %2133 = vadd.xlane.f32.xlu1 %v2130_v11 }
 0x763   : > { %v2134_v12 = vpop.xlane.xlu1 %2133 }
 0x764   : > { %v2135_v13 = vmul.f32 %v2134_v12, %v3348_v27 }
 0x766   : > { %v2136_v14 = vsub.f32 %v2130_v11, %v2135_v13 }
 0x768   : > { %v2137_v15 = vmul.f32 %v2136_v14, %v2136_v14 }
 0x76a   : > { %2138 = vadd.xlane.f32.xlu2 %v2137_v15 }
 0x7dd   : > { %v2139_v16 = vpop.xlane.xlu2 %2138 }
 0x7de   : > { %v2140_v18 = vmul.f32 %v2139_v16, %v3348_v27  ;;  %v2649_v27 = vld [vmem:[%s1029_s12] ss:$0 sm:$0xff] }
 0x7e0   : > { %v2141_v19 = vadd.f32 1e-12, %v2140_v18 }
 0x7e2   : > { %2674 = vrsqrt.f32 %v2141_v19  ;;  %vm2148_vm11 = vweird.f32 %v2141_v19 }
 0x7e8   : > { %v2675_v20 = vpop.eup %2674 }
 0x7e9   : > { %v2143_v21 = vmul.f32 %v2675_v20, %v2141_v19  ;;  %vm2149_vm10 = vweird.f32 %v2675_v20 }
 0x7ea   : > { %vm2150_vm12 = vmor %vm2148_vm11, %vm2149_vm10 }
 0x7eb   : > { %v2144_v22 = vmul.f32 %v2675_v20, %v2143_v21 }
 0x7ed   : > { %v2145_v23 = vmul.f32 0.5, %v2144_v22 }
 0x7ef   : > { %v2146_v24 = vsub.f32 1.5, %v2145_v23 }
 0x7f1   : > { %v2147_v17 = vmul.f32 %v2675_v20, %v2146_v24 }
 0x7f3   : > { %v2151_v26 = vsel %vm2150_vm12, %v2675_v20, %v2147_v17 }
 0x7f4   : > { %v2152_v7 = vmul.f32 %v2151_v26, %v2136_v14 }
 0x7f6   : > { %v2156_v28 = vmul.f32 %v2648_v25, %v2152_v7  ;;  %2165 = sbr.rel (%p2543_p1) target bundleno = 2334 (0x91e), region = 124 }
 0x7f8   : > { %v2160_v29 = vadd.f32 %v2649_v27, %v2156_v28 }
 0x7fa   : > { %2161 = vst [vmem:[#allocation2] sm:$0xff] %v2160_v29 }
 0x7fb   : > { %v2181_v30 = vld [vmem:[%s3714_s18 + $0x78] sm:$0xff]  ;;  %v2180_v31 = vld [vmem:[%s3714_s18 + $0x70] sm:$0xff]  ;;  %v2179_v32 = vld [vmem:[%s3714_s18 + $0x68] sm:$0xff] }
 0x7fc   : > { %2183 = vmatpush.msra.mxu0 %v2181_v30  ;;  %v2178_v33 = vld [vmem:[%s3714_s18 + $0x60] sm:$0xff]  ;;  %v2219_v34 = vld [vmem:[%s3715_s13 + $0x78] sm:$0xff]  ;;  %v2218_v35 = vld [vmem:[%s3715_s13 + $0x70] sm:$0xff] }
 0x7fd   : > { %v2177_v36 = vld [vmem:[%s3714_s18 + $0x58] sm:$0xff]  ;;  %2221 = vmatpush.msra.mxu1 %v2219_v34  ;;  %v2217_v37 = vld [vmem:[%s3715_s13 + $0x68] sm:$0xff]  ;;  %v2176_v38 = vld [vmem:[%s3714_s18 + $0x50] sm:$0xff] }
 0x7fe   : > { %2184 = vmatpush.msra.mxu0 %v2180_v31  ;;  %v2216_v39 = vld [vmem:[%s3715_s13 + $0x60] sm:$0xff]  ;;  %v2175_v40 = vld [vmem:[%s3714_s18 + $0x48] sm:$0xff]  ;;  %v2215_v41 = vld [vmem:[%s3715_s13 + $0x58] sm:$0xff] }
 0x7ff   : > { %2222 = vmatpush.msra.mxu1 %v2218_v35  ;;  %v2174_v42 = vld [vmem:[%s3714_s18 + $0x40] sm:$0xff]  ;;  %v2214_v43 = vld [vmem:[%s3715_s13 + $0x50] sm:$0xff]  ;;  %v2173_v44 = vld [vmem:[%s3714_s18 + $0x38] sm:$0xff] }
 0x800   : > { %2185 = vmatpush.msra.mxu0 %v2179_v32  ;;  %v2213_v45 = vld [vmem:[%s3715_s13 + $0x48] sm:$0xff]  ;;  %v2172_v46 = vld [vmem:[%s3714_s18 + $0x30] sm:$0xff]  ;;  %v2212_v47 = vld [vmem:[%s3715_s13 + $0x40] sm:$0xff] }
 0x801   : > { %2223 = vmatpush.msra.mxu1 %v2217_v37  ;;  %v2171_v48 = vld [vmem:[%s3714_s18 + $0x28] sm:$0xff]  ;;  %v2211_v49 = vld [vmem:[%s3715_s13 + $0x38] sm:$0xff]  ;;  %v2170_v50 = vld [vmem:[%s3714_s18 + $0x20] sm:$0xff] }
 0x802   : > { %2186 = vmatpush.msra.mxu0 %v2178_v33  ;;  %v2210_v51 = vld [vmem:[%s3715_s13 + $0x30] sm:$0xff]  ;;  %v2169_v52 = vld [vmem:[%s3714_s18 + $0x18] sm:$0xff]  ;;  %v2209_v53 = vld [vmem:[%s3715_s13 + $0x28] sm:$0xff] }
 0x803   : > { %2224 = vmatpush.msra.mxu1 %v2216_v39  ;;  %v2168_v54 = vld [vmem:[%s3714_s18 + $0x10] sm:$0xff]  ;;  %v2208_v55 = vld [vmem:[%s3715_s13 + $0x20] sm:$0xff]  ;;  %v2167_v56 = vld [vmem:[%s3714_s18 + $0x8] sm:$0xff] }
 0x804   : > { %2187 = vmatpush.msra.mxu0 %v2177_v36  ;;  %v2207_v57 = vld [vmem:[%s3715_s13 + $0x18] sm:$0xff]  ;;  %v2166_v58 = vld [vmem:[%s3714_s18] sm:$0xff]  ;;  %v2206_v59 = vld [vmem:[%s3715_s13 + $0x10] sm:$0xff] }
 0x805   : > { %2225 = vmatpush.msra.mxu1 %v2215_v41  ;;  %v2205_v60 = vld [vmem:[%s3715_s13 + $0x8] sm:$0xff]  ;;  %v2204_v61 = vld [vmem:[%s3715_s13] sm:$0xff] }
 0x806   : > { %2188 = vmatpush.msra.mxu0 %v2176_v38  ;;  %v2182_v62 = vld [vmem:[%s3716_s19] sm:$0x1] }
 0x807   : > { %2226 = vmatpush.msra.mxu1 %v2214_v43  ;;  %v2220_v2 = vld [vmem:[%s3717_s23] sm:$0x1] }
 0x808   : > { %2189 = vmatpush.msra.mxu0 %v2175_v40 }
 0x809   : > { %2227 = vmatpush.msra.mxu1 %v2213_v45 }
 0x80a   : > { %2190 = vmatpush.msra.mxu0 %v2174_v42 }
 0x80b   : > { %2228 = vmatpush.msra.mxu1 %v2212_v47 }
 0x80c   : > { %2191 = vmatpush.msra.mxu0 %v2173_v44 }
 0x80d   : > { %2229 = vmatpush.msra.mxu1 %v2211_v49 }
 0x80e   : > { %2192 = vmatpush.msra.mxu0 %v2172_v46 }
 0x80f   : > { %2230 = vmatpush.msra.mxu1 %v2210_v51 }
 0x810   : > { %2193 = vmatpush.msra.mxu0 %v2171_v48 }
 0x811   : > { %2231 = vmatpush.msra.mxu1 %v2209_v53 }
 0x812   : > { %2194 = vmatpush.msra.mxu0 %v2170_v50 }
 0x813   : > { %2232 = vmatpush.msra.mxu1 %v2208_v55 }
 0x814   : > { %2195 = vmatpush.msra.mxu0 %v2169_v52 }
 0x815   : > { %2233 = vmatpush.msra.mxu1 %v2207_v57 }
 0x816   : > { %2196 = vmatpush.msra.mxu0 %v2168_v54 }
 0x817   : > { %2234 = vmatpush.msra.mxu1 %v2206_v59 }
 0x818   : > { %2197 = vmatpush.msra.mxu0 %v2167_v56 }
 0x819   : > { %2235 = vmatpush.msra.mxu1 %v2205_v60 }
 0x81a   : > { %2198 = vmatpush.msra.mxu0 %v2166_v58 }
 0x81b   : > { %2199 = vmatmul.f32.vlgmr.msra.gmra.mxu0 %v2160_v29  ;;  %2236 = vmatpush.msra.mxu1 %v2204_v61 }
 0x898   : > { %v2200_v63 = vpop.f32.mrf.mxu0 }
 0x899   : > { %v2201_v0 = vadd.f32 %v2200_v63, %v2182_v62 }
 0x89b   : > { %v2203_v1 = vmax.f32 %v2201_v0, 0.0 }
 0x89d   : > { %2237 = vmatmul.f32.vlgmr.msra.gmra.mxu1 %v2203_v1 }
 0x91a   : > { %v2238_v3 = vpop.f32.mrf.mxu1 }
 0x91b   : > { %v2239_v4 = vadd.f32 %v2238_v3, %v2220_v2 }
 0x91d   : > { %2241 = vst [vmem:[%s3066_s28] sm:$0x1] %v2239_v4 }
 0x91e PF: > { %s3718_s30 = sld [smem:[#allocation9_spill]]  ;;  %s2253_s4 = sshll.u32 %s3066_s28, 4  ;;  %s2254_s4 = int_to_ptr.vmem [resolvable:$true] %s2253_s4 }
 0x91f   : > { %s3719_s25 = sld [smem:[#allocation42_spill]]  ;;  %s3721_s10 = sand.u32 1, %s2746_s26  }
 0x920   : > { %s2243_s14 = scalar_lea.sflag [#allocation4], %s3721_s10 }
 0x925   : > { %s2251_s12 = scalar_lea.hbm %s3719_s25, %s3718_s30  ;;  %s2696_s24 = scalar_lea.hbm %s3719_s25, 2 }
 0x926   : > { %s2255_s7 = sshll.u32 %s2251_s12, 4  ;;  %s2256_s7 = int_to_ptr.hbm [resolvable:$true] %s2255_s7 }
 0x927   : > { %s2690_s0 = sshra.s32 %s2256_s7, 4  ;;  %s2691_s0 = int_to_ptr.hbm [resolvable:$true] %s2690_s0 }
 0x928   : > { %s2692_s1 = scalar_lea.hbm %s2691_s0, 1  ;;  %p2697_p6 = scmp.lt.s32.totalorder %s2691_s0, %s3719_s25 }
 0x929   : > { %p2693_p2 = scmp.ne.s32.totalorder %s2691_s0, %s2692_s1  ;;  %p2698_p7 = scmp.lt.s32.totalorder %s2696_s24, %s2692_s1 }
 0x92b   : > { %p2694_p4 = pnand %p2693_p2, %p2948_p3  ;;  %p2699_p8 = por %p2698_p7, %p2697_p6 }
 0x92d   : > { %p2695_p5 = pneg %p2694_p4 }
 0x92f   : > { %p2700_p10 = pnand %p2699_p8, %p2695_p5 }
 0x931   : > { %2703 = shalt.err (!%p2700_p10)
}
 0x932   : > { %2552 = dma.vmem_to_hbm [thread:$0]  (%p2948_p3), %s2254_s4, 16, %s2256_s7, %s2243_s14  }
 0x933 PF: > { %s3722_s28 = sld [smem:[#allocation12_spill]] }
 0x934   : > { %s3723_s27 = sld [smem:[#allocation6_spill]] }
 0x939   : > { %p2558_p11 = scmp.ge.s32.totalorder %s3722_s28, 2 }
 0x93a   : > { %s2267_s19 = sand.u32 1, %s3723_s27  }
 0x93b   : > { %p2555_p12 = pnand %p2558_p11, %p2958_p9  ;;  %s2268_s22 = scalar_lea.sflag [#allocation4], %s2267_s19 }
 0x93d   : > { %p2556_p13 = pneg %p2555_p12 }
 0x93f   : > { %2737 = dma.done.wait (%p2556_p13), %s2268_s22, 16  }
 0x940   : > { %2739 = vsyncadd (%p2556_p13), %s2268_s22, 4294967280  ;;  %s37_s0 = sadd.s32 1, %s3722_s28   ;;  %s3725_s3 = sld [smem:[#allocation7_spill]] }
 0x941   : > { %p34_p0 = scmp.ge.s32.totalorder %s37_s0, 6   ;;  %s3726_s27 = sld [smem:[#allocation17_spill]] }
 0x942   : > { %s3727_s28 = sld [smem:[#allocation10_spill]]  ;;  %s3731_s5 = smov %s2746_s26 }
 0x943   : > { %s3728_s6 = sld [smem:[#allocation11_spill]]  ;;  %36 = sbr.rel (!%p34_p0) target bundleno = 27 (0x1b), region = 210 }
 0x944   : > { %s3729_s2 = sld [smem:[#allocation13_spill]] }
 0x945   : > { %s3730_s29 = sld [smem:[#allocation15_spill]] }
 0x946   : > { %s3732_s26 = smov %s3725_s3 }
 0x948   :  { %2273 = vsyncpa [#allocation4], 1 }
 0x949   :  { %2275 = vsyncpa [#allocation4 + $0x1], 1 }

</bundles_post_ra>
